<compile_context>
chip_gen: v6e
topology: v6e:2x2x1
jax: 0.10.0
libtpu: 0.0.40
codegen_flags: <defaults>
</compile_context>

<pallas_src>
import functools

import jax
import jax.numpy as jnp
from jax import lax
from jax.experimental import pallas as pl
from jax.experimental.pallas import tpu as pltpu

LANE = 128
VMEM_LIMIT = 32 * 1024 * 1024  # safe on v5e / v6e / v7x


def _round_up(x, m):
    return (x + m - 1) // m * m


# --------------------------------------------------------------------------------------
# Kernel 1: fused 3x3 conv (9 shifted matmuls) + folded-BN shift + ReLU
# --------------------------------------------------------------------------------------
def _conv3x3_bn_relu_kernel(x_ref, w_ref, s_ref, o_ref, *, TH, W, Wp):
    # x_ref: (1, (TH+3)*Wp, Cin) bf16 -- zero-padded, halo'd row tile, spatially flattened
    # w_ref: (9, Cin, Cp)        bf16 -- conv weights with BN scale folded in (Cp = padded Cout)
    # s_ref: (1, Cp)             f32  -- folded BN shift
    # o_ref: (1, TH, W, Cp)      bf16
    L = TH * Wp
    acc = None
    for ky in range(3):
        for kx in range(3):
            off = ky * Wp + kx                             # static sublane offset of this tap
            lhs = x_ref[0, pl.ds(off, L), :]               # (L, Cin) bf16
            part = jnp.dot(lhs, w_ref[3 * ky + kx],
                           preferred_element_type=jnp.float32)
            acc = part if acc is None else acc + part      # f32 accumulation
    cp = acc.shape[-1]
    # Drop the Wp-W padded garbage columns (windows that wrap across padded rows).
    y = acc.reshape(TH, Wp, cp)[:, :W, :]
    y = jnp.maximum(y + s_ref[...], 0.0)
    o_ref[0] = y.astype(o_ref.dtype)


def _pad_and_tile(x_nhwc, TH, Wp):
    """Zero-pad (top=1, bottom=2, left=1, right=Wp-W-1) and cut halo'd row tiles of TH+3 rows."""
    N, H, W, C = x_nhwc.shape
    T = H // TH
    xp = jnp.pad(x_nhwc, ((0, 0), (1, 2), (1, Wp - W - 1), (0, 0)))       # (N, H+3, Wp, C)
    tiles = jnp.stack([xp[:, t * TH: t * TH + TH + 3] for t in range(T)], axis=1)
    return tiles.reshape(N * T, (TH + 3) * Wp, C)                         # flattened spatial


def conv3x3_bn_relu(x_nhwc, wmat_bf16, shift_f32, *, TH):
    """3x3 conv (stride 1, pad 1) + folded BN + ReLU.  x: (N,H,W,Cin) bf16 -> (N,H,W,Cp) bf16."""
    N, H, W, Cin = x_nhwc.shape
    Cp = wmat_bf16.shape[-1]
    assert H % TH == 0 and TH % 2 == 0, "tile height must divide H and be even"
    T = H // TH
    Wp = _round_up(W + 2, 8)          # padded row stride (multiple of 8 -> clean sublane tiling)
    LP = (TH + 3) * Wp

    xt = _pad_and_tile(x_nhwc, TH, Wp)                                    # (N*T, LP, Cin) bf16

    kern = functools.partial(_conv3x3_bn_relu_kernel, TH=TH, W=W, Wp=Wp)
    out = pl.pallas_call(
        kern,
        out_shape=jax.ShapeDtypeStruct((N * T, TH, W, Cp), jnp.bfloat16),
        grid=(N * T,),
        in_specs=[
            pl.BlockSpec((1, LP, Cin), lambda i: (i, 0, 0)),
            pl.BlockSpec((9, Cin, Cp), lambda i: (0, 0, 0)),   # constant -> weight tile reused
            pl.BlockSpec((1, Cp), lambda i: (0, 0)),
        ],
        out_specs=pl.BlockSpec((1, TH, W, Cp), lambda i: (i, 0, 0, 0)),
        compiler_params=pltpu.CompilerParams(
            dimension_semantics=("parallel",),
            vmem_limit_bytes=VMEM_LIMIT),
    )(xt, wmat_bf16, shift_f32)
    # TODO(synk): for very large Cout (>512) add a Cout-tile grid axis; current sizes fit VMEM.
    return out.reshape(N, H, W, Cp)


# --------------------------------------------------------------------------------------
# Kernel 2: 2x2 / stride-2 max-pool with PyTorch-style argmax (first max wins)
# --------------------------------------------------------------------------------------
def _maxpool2x2_argmax_kernel(x_ref, o_ref, i_ref, *, W, THo, T):
    # x_ref: (1, THo, 2, Wo, 2*Cp) bf16 -- lane-packed view of one (TH, W, Cp) conv-output tile
    # o_ref: (1, THo, Wo, Cp) f32, i_ref: (1, THo, Wo, Cp) int32 (flat h*W + w indices)
    Cp = o_ref.shape[-1]
    top = x_ref[0, :, 0, :, :].astype(jnp.float32)    # rows 2*ho
    bot = x_ref[0, :, 1, :, :].astype(jnp.float32)    # rows 2*ho + 1
    tl, tr = top[..., :Cp], top[..., Cp:]             # aligned lane slices (Cp % 128 == 0)
    bl, br = bot[..., :Cp], bot[..., Cp:]

    take_tr = tr > tl                                 # strict '>' => first max (row-major) wins
    m_top = jnp.where(take_tr, tr, tl)
    dx_top = take_tr.astype(jnp.int32)
    take_br = br > bl
    m_bot = jnp.where(take_br, br, bl)
    dx_bot = take_br.astype(jnp.int32)
    take_bot = m_bot > m_top

    o_ref[0] = jnp.where(take_bot, m_bot, m_top)
    dy = take_bot.astype(jnp.int32)
    dx = jnp.where(take_bot, dx_bot, dx_top)

    shape = (o_ref.shape[1], o_ref.shape[2], Cp)      # (THo, Wo, Cp)
    ho_l = lax.broadcasted_iota(jnp.int32, shape, 0)
    wo = lax.broadcasted_iota(jnp.int32, shape, 1)
    t = pl.program_id(0) % T                          # row-tile index of this grid step
    ho = t * THo + ho_l
    i_ref[0] = (2 * ho) * W + 2 * wo + dy * W + dx


def maxpool2x2_with_argmax(y_nhwc, *, TH):
    N, H, W, Cp = y_nhwc.shape
    assert H % 2 == 0 and W % 2 == 0  # PyTorch MaxPool2d(2,2) floors odd dims; not handled here
    T, THo, Wo = H // TH, TH // 2, W // 2
    # Pure-metadata reshape: same HBM bytes, 2x2 window phases exposed on a (2, 2*Cp) split.
    xv = y_nhwc.reshape(N * T, THo, 2, Wo, 2 * Cp)

    kern = functools.partial(_maxpool2x2_argmax_kernel, W=W, THo=THo, T=T)
    pooled, idx = pl.pallas_call(
        kern,
        out_shape=(jax.ShapeDtypeStruct((N * T, THo, Wo, Cp), jnp.float32),
                   jax.ShapeDtypeStruct((N * T, THo, Wo, Cp), jnp.int32)),
        grid=(N * T,),
        in_specs=[pl.BlockSpec((1, THo, 2, Wo, 2 * Cp), lambda i: (i, 0, 0, 0, 0))],
        out_specs=(pl.BlockSpec((1, THo, Wo, Cp), lambda i: (i, 0, 0, 0)),
                   pl.BlockSpec((1, THo, Wo, Cp), lambda i: (i, 0, 0, 0))),
        compiler_params=pltpu.CompilerParams(
            dimension_semantics=("parallel",),
            vmem_limit_bytes=VMEM_LIMIT),
    )(xv)
    return (pooled.reshape(N, H // 2, Wo, Cp),
            idx.reshape(N, H // 2, Wo, Cp))


# --------------------------------------------------------------------------------------
# Parameters + forward pass
# --------------------------------------------------------------------------------------
def init_params(key, in_size, out_size):
    layers = []
    cin = in_size
    for _ in range(3):
        key, kw, kb, kg, kbe, km, kv = jax.random.split(key, 7)
        layers.append(dict(
            w=0.1 * jax.random.normal(kw, (3, 3, cin, out_size), jnp.float32),   # HWIO
            b=0.1 * jax.random.normal(kb, (out_size,), jnp.float32),
            gamma=1.0 + 0.1 * jax.random.normal(kg, (out_size,), jnp.float32),
            beta=0.1 * jax.random.normal(kbe, (out_size,), jnp.float32),
            mean=0.1 * jax.random.normal(km, (out_size,), jnp.float32),
            var=jax.random.uniform(kv, (out_size,), jnp.float32, 0.5, 1.5),
        ))
        cin = out_size
    return layers


def _fold_bn(layer, cin_pad, cout_pad, eps=1e-5):
    """Fold BN scale into bf16 conv weights; pad channels to lane multiples; return f32 shift."""
    # TODO(synk): BatchNorm is implemented in inference mode (running stats), not training mode.
    inv = layer["gamma"] / jnp.sqrt(layer["var"] + eps)
    w = layer["w"] * inv[None, None, None, :]
    shift = layer["beta"] + (layer["b"] - layer["mean"]) * inv
    _, _, cin, cout = w.shape
    w = jnp.pad(w, ((0, 0), (0, 0), (0, cin_pad - cin), (0, cout_pad - cout)))
    shift = jnp.pad(shift, (0, cout_pad - cout))     # padded channels -> ReLU(0+0)=0, stay inert
    wmat = w.reshape(9, cin_pad, cout_pad).astype(jnp.bfloat16)
    return wmat, shift.reshape(1, cout_pad).astype(jnp.float32)


def segnet_down3_forward(x_nchw, layers, *, tile_h=8):
    N, Cin, H, W = x_nchw.shape
    Cout = layers[-1]["w"].shape[-1]
    Cp = _round_up(Cout, LANE)                       # lane-dense internal channel width
    x = jnp.transpose(x_nchw, (0, 2, 3, 1)).astype(jnp.bfloat16)   # NCHW -> NHWC, bf16
    cin_pads = [Cin, Cp, Cp]
    for layer, cin_p in zip(layers, cin_pads):
        wmat, shift = _fold_bn(layer, cin_p, Cp)
        x = conv3x3_bn_relu(x, wmat, shift, TH=tile_h)             # (N, H, W, Cp) bf16
    unpooled_shape = (N, Cout, H, W)                 # matches PyTorch outputs.size() (NCHW)
    pooled, idx = maxpool2x2_with_argmax(x, TH=tile_h)
    pooled = jnp.transpose(pooled[..., :Cout], (0, 3, 1, 2))
    idx = jnp.transpose(idx[..., :Cout], (0, 3, 1, 2))
    # TODO(synk): PyTorch returns int64 indices; int32 is used (JAX x64 disabled by default).
    return pooled, idx, unpooled_shape


# --------------------------------------------------------------------------------------
# Pure-JAX reference (same folded bf16 weights / bf16 activations) for a sanity check
# --------------------------------------------------------------------------------------
def _ref_forward(x_nchw, layers):
    N, Cin, H, W = x_nchw.shape
    Cout = layers[-1]["w"].shape[-1]
    Cp = _round_up(Cout, LANE)
    x = jnp.transpose(x_nchw, (0, 2, 3, 1)).astype(jnp.bfloat16)
    cin_pads = [Cin, Cp, Cp]
    for layer, cin_p in zip(layers, cin_pads):
        wmat, shift = _fold_bn(layer, cin_p, Cp)
        w = wmat.reshape(3, 3, cin_p, Cp)
        y = lax.conv_general_dilated(
            x, w, (1, 1), ((1, 1), (1, 1)),
            dimension_numbers=("NHWC", "HWIO", "NHWC"),
            preferred_element_type=jnp.float32)
        x = jnp.maximum(y + shift.reshape(1, 1, 1, Cp), 0.0).astype(jnp.bfloat16)
    xf = x.astype(jnp.float32)
    pooled = lax.reduce_window(xf, -jnp.inf, lax.max, (1, 2, 2, 1), (1, 2, 2, 1), "VALID")
    conv3_nchw = jnp.transpose(xf[..., :Cout], (0, 3, 1, 2))
    pooled_nchw = jnp.transpose(pooled[..., :Cout], (0, 3, 1, 2))
    return pooled_nchw, conv3_nchw


if __name__ == "__main__":
    N, Cin, Cout, H, W = 2, 4, 8, 16, 16
    key = jax.random.PRNGKey(0)
    key, kx = jax.random.split(key)
    x_nchw = jax.random.normal(kx, (N, Cin, H, W), jnp.float32)
    layers = init_params(key, Cin, Cout)

    pooled, indices, unpooled_shape = segnet_down3_forward(x_nchw, layers)
    jax.block_until_ready((pooled, indices))

    assert pooled.shape == (N, Cout, H // 2, W // 2)
    assert indices.shape == (N, Cout, H // 2, W // 2)
    assert unpooled_shape == (N, Cout, H, W)

    ref_pooled, ref_conv3 = _ref_forward(x_nchw, layers)
    assert jnp.allclose(pooled, ref_pooled, rtol=2e-2, atol=2e-2), "pooled values mismatch"
    assert int(indices.min()) >= 0 and int(indices.max()) < H * W, "indices out of range"
    # the returned flat indices must point at the window maximum in each (H, W) plane
    gathered = jnp.take_along_axis(
        ref_conv3.reshape(N, Cout, H * W), indices.reshape(N, Cout, -1), axis=2
    ).reshape(pooled.shape)
    assert jnp.allclose(gathered, ref_pooled, rtol=2e-2, atol=2e-2), "argmax indices mismatch"

    print("KERNEL_OK")
</pallas_src>

<mosaic_0001>
module attributes {stable_mosaic.version = 11 : i64} {
  func.func @_conv3x3_bn_relu_kernel(%arg0: i32, %arg1: memref<1x264x4xbf16, #tpu.memory_space<vmem>>, %arg2: memref<9x4x128xbf16, #tpu.memory_space<vmem>>, %arg3: memref<1x128xf32, #tpu.memory_space<vmem>>, %arg4: memref<1x8x16x128xbf16, #tpu.memory_space<vmem>>) attributes {dimension_semantics = [#tpu.dimension_semantics<parallel>], iteration_bounds = array<i64: 4>, scalar_prefetch = 0 : i64, scratch_operands = 0 : i64, tpu.core_type = #tpu.core_type<tc>, window_params = [{transform_indices = @transform_0, window_bounds = array<i64: 1, 264, 4>}, {pipeline_mode = #tpu.pipeline_mode<synchronous>, transform_indices = @transform_1, window_bounds = array<i64: 9, 4, 128>}, {pipeline_mode = #tpu.pipeline_mode<synchronous>, transform_indices = @transform_2, window_bounds = array<i64: 1, 128>}, {transform_indices = @transform_3, window_bounds = array<i64: 1, 8, 16, 128>}]} {
    %c0 = arith.constant 0 : index
    %c0_0 = arith.constant 0 : index
    %c0_1 = arith.constant 0 : index
    %0 = vector.load %arg1[%c0, %c0_0, %c0_1] : memref<1x264x4xbf16, #tpu.memory_space<vmem>>, vector<1x192x4xbf16>
    %1 = vector.shape_cast %0 : vector<1x192x4xbf16> to vector<192x4xbf16>
    %c0_2 = arith.constant 0 : index
    %c0_3 = arith.constant 0 : index
    %c0_4 = arith.constant 0 : index
    %2 = vector.load %arg2[%c0_2, %c0_3, %c0_4] : memref<9x4x128xbf16, #tpu.memory_space<vmem>>, vector<1x4x128xbf16>
    %3 = vector.shape_cast %2 : vector<1x4x128xbf16> to vector<4x128xbf16>
    %cst = arith.constant dense<0.000000e+00> : vector<192x128xf32>
    %4 = tpu.matmul %1, %3, %cst {dimension_numbers = #tpu.dot_dimension_numbers<[1], [0], [0], [1], [0, 0, 1, 1], [], []>} : vector<192x4xbf16>, vector<4x128xbf16>, vector<192x128xf32> -> vector<192x128xf32>
    %c0_5 = arith.constant 0 : index
    %c1 = arith.constant 1 : index
    %c0_6 = arith.constant 0 : index
    %5 = vector.load %arg1[%c0_5, %c1, %c0_6] : memref<1x264x4xbf16, #tpu.memory_space<vmem>>, vector<1x192x4xbf16>
    %6 = vector.shape_cast %5 : vector<1x192x4xbf16> to vector<192x4xbf16>
    %c1_7 = arith.constant 1 : index
    %c0_8 = arith.constant 0 : index
    %c0_9 = arith.constant 0 : index
    %7 = vector.load %arg2[%c1_7, %c0_8, %c0_9] : memref<9x4x128xbf16, #tpu.memory_space<vmem>>, vector<1x4x128xbf16>
    %8 = vector.shape_cast %7 : vector<1x4x128xbf16> to vector<4x128xbf16>
    %cst_10 = arith.constant dense<0.000000e+00> : vector<192x128xf32>
    %9 = tpu.matmul %6, %8, %cst_10 {dimension_numbers = #tpu.dot_dimension_numbers<[1], [0], [0], [1], [0, 0, 1, 1], [], []>} : vector<192x4xbf16>, vector<4x128xbf16>, vector<192x128xf32> -> vector<192x128xf32>
    %10 = arith.addf %4, %9 : vector<192x128xf32>
    %c0_11 = arith.constant 0 : index
    %c2 = arith.constant 2 : index
    %c0_12 = arith.constant 0 : index
    %11 = vector.load %arg1[%c0_11, %c2, %c0_12] : memref<1x264x4xbf16, #tpu.memory_space<vmem>>, vector<1x192x4xbf16>
    %12 = vector.shape_cast %11 : vector<1x192x4xbf16> to vector<192x4xbf16>
    %c2_13 = arith.constant 2 : index
    %c0_14 = arith.constant 0 : index
    %c0_15 = arith.constant 0 : index
    %13 = vector.load %arg2[%c2_13, %c0_14, %c0_15] : memref<9x4x128xbf16, #tpu.memory_space<vmem>>, vector<1x4x128xbf16>
    %14 = vector.shape_cast %13 : vector<1x4x128xbf16> to vector<4x128xbf16>
    %cst_16 = arith.constant dense<0.000000e+00> : vector<192x128xf32>
    %15 = tpu.matmul %12, %14, %cst_16 {dimension_numbers = #tpu.dot_dimension_numbers<[1], [0], [0], [1], [0, 0, 1, 1], [], []>} : vector<192x4xbf16>, vector<4x128xbf16>, vector<192x128xf32> -> vector<192x128xf32>
    %16 = arith.addf %10, %15 : vector<192x128xf32>
    %c0_17 = arith.constant 0 : index
    %c24 = arith.constant 24 : index
    %c0_18 = arith.constant 0 : index
    %17 = vector.load %arg1[%c0_17, %c24, %c0_18] : memref<1x264x4xbf16, #tpu.memory_space<vmem>>, vector<1x192x4xbf16>
    %18 = vector.shape_cast %17 : vector<1x192x4xbf16> to vector<192x4xbf16>
    %c3 = arith.constant 3 : index
    %c0_19 = arith.constant 0 : index
    %c0_20 = arith.constant 0 : index
    %19 = vector.load %arg2[%c3, %c0_19, %c0_20] : memref<9x4x128xbf16, #tpu.memory_space<vmem>>, vector<1x4x128xbf16>
    %20 = vector.shape_cast %19 : vector<1x4x128xbf16> to vector<4x128xbf16>
    %cst_21 = arith.constant dense<0.000000e+00> : vector<192x128xf32>
    %21 = tpu.matmul %18, %20, %cst_21 {dimension_numbers = #tpu.dot_dimension_numbers<[1], [0], [0], [1], [0, 0, 1, 1], [], []>} : vector<192x4xbf16>, vector<4x128xbf16>, vector<192x128xf32> -> vector<192x128xf32>
    %22 = arith.addf %16, %21 : vector<192x128xf32>
    %c0_22 = arith.constant 0 : index
    %c25 = arith.constant 25 : index
    %c0_23 = arith.constant 0 : index
    %23 = vector.load %arg1[%c0_22, %c25, %c0_23] : memref<1x264x4xbf16, #tpu.memory_space<vmem>>, vector<1x192x4xbf16>
    %24 = vector.shape_cast %23 : vector<1x192x4xbf16> to vector<192x4xbf16>
    %c4 = arith.constant 4 : index
    %c0_24 = arith.constant 0 : index
    %c0_25 = arith.constant 0 : index
    %25 = vector.load %arg2[%c4, %c0_24, %c0_25] : memref<9x4x128xbf16, #tpu.memory_space<vmem>>, vector<1x4x128xbf16>
    %26 = vector.shape_cast %25 : vector<1x4x128xbf16> to vector<4x128xbf16>
    %cst_26 = arith.constant dense<0.000000e+00> : vector<192x128xf32>
    %27 = tpu.matmul %24, %26, %cst_26 {dimension_numbers = #tpu.dot_dimension_numbers<[1], [0], [0], [1], [0, 0, 1, 1], [], []>} : vector<192x4xbf16>, vector<4x128xbf16>, vector<192x128xf32> -> vector<192x128xf32>
    %28 = arith.addf %22, %27 : vector<192x128xf32>
    %c0_27 = arith.constant 0 : index
    %c26 = arith.constant 26 : index
    %c0_28 = arith.constant 0 : index
    %29 = vector.load %arg1[%c0_27, %c26, %c0_28] : memref<1x264x4xbf16, #tpu.memory_space<vmem>>, vector<1x192x4xbf16>
    %30 = vector.shape_cast %29 : vector<1x192x4xbf16> to vector<192x4xbf16>
    %c5 = arith.constant 5 : index
    %c0_29 = arith.constant 0 : index
    %c0_30 = arith.constant 0 : index
    %31 = vector.load %arg2[%c5, %c0_29, %c0_30] : memref<9x4x128xbf16, #tpu.memory_space<vmem>>, vector<1x4x128xbf16>
    %32 = vector.shape_cast %31 : vector<1x4x128xbf16> to vector<4x128xbf16>
    %cst_31 = arith.constant dense<0.000000e+00> : vector<192x128xf32>
    %33 = tpu.matmul %30, %32, %cst_31 {dimension_numbers = #tpu.dot_dimension_numbers<[1], [0], [0], [1], [0, 0, 1, 1], [], []>} : vector<192x4xbf16>, vector<4x128xbf16>, vector<192x128xf32> -> vector<192x128xf32>
    %34 = arith.addf %28, %33 : vector<192x128xf32>
    %c0_32 = arith.constant 0 : index
    %c48 = arith.constant 48 : index
    %c0_33 = arith.constant 0 : index
    %35 = vector.load %arg1[%c0_32, %c48, %c0_33] : memref<1x264x4xbf16, #tpu.memory_space<vmem>>, vector<1x192x4xbf16>
    %36 = vector.shape_cast %35 : vector<1x192x4xbf16> to vector<192x4xbf16>
    %c6 = arith.constant 6 : index
    %c0_34 = arith.constant 0 : index
    %c0_35 = arith.constant 0 : index
    %37 = vector.load %arg2[%c6, %c0_34, %c0_35] : memref<9x4x128xbf16, #tpu.memory_space<vmem>>, vector<1x4x128xbf16>
    %38 = vector.shape_cast %37 : vector<1x4x128xbf16> to vector<4x128xbf16>
    %cst_36 = arith.constant dense<0.000000e+00> : vector<192x128xf32>
    %39 = tpu.matmul %36, %38, %cst_36 {dimension_numbers = #tpu.dot_dimension_numbers<[1], [0], [0], [1], [0, 0, 1, 1], [], []>} : vector<192x4xbf16>, vector<4x128xbf16>, vector<192x128xf32> -> vector<192x128xf32>
    %40 = arith.addf %34, %39 : vector<192x128xf32>
    %c0_37 = arith.constant 0 : index
    %c49 = arith.constant 49 : index
    %c0_38 = arith.constant 0 : index
    %41 = vector.load %arg1[%c0_37, %c49, %c0_38] : memref<1x264x4xbf16, #tpu.memory_space<vmem>>, vector<1x192x4xbf16>
    %42 = vector.shape_cast %41 : vector<1x192x4xbf16> to vector<192x4xbf16>
    %c7 = arith.constant 7 : index
    %c0_39 = arith.constant 0 : index
    %c0_40 = arith.constant 0 : index
    %43 = vector.load %arg2[%c7, %c0_39, %c0_40] : memref<9x4x128xbf16, #tpu.memory_space<vmem>>, vector<1x4x128xbf16>
    %44 = vector.shape_cast %43 : vector<1x4x128xbf16> to vector<4x128xbf16>
    %cst_41 = arith.constant dense<0.000000e+00> : vector<192x128xf32>
    %45 = tpu.matmul %42, %44, %cst_41 {dimension_numbers = #tpu.dot_dimension_numbers<[1], [0], [0], [1], [0, 0, 1, 1], [], []>} : vector<192x4xbf16>, vector<4x128xbf16>, vector<192x128xf32> -> vector<192x128xf32>
    %46 = arith.addf %40, %45 : vector<192x128xf32>
    %c0_42 = arith.constant 0 : index
    %c50 = arith.constant 50 : index
    %c0_43 = arith.constant 0 : index
    %47 = vector.load %arg1[%c0_42, %c50, %c0_43] : memref<1x264x4xbf16, #tpu.memory_space<vmem>>, vector<1x192x4xbf16>
    %48 = vector.shape_cast %47 : vector<1x192x4xbf16> to vector<192x4xbf16>
    %c8 = arith.constant 8 : index
    %c0_44 = arith.constant 0 : index
    %c0_45 = arith.constant 0 : index
    %49 = vector.load %arg2[%c8, %c0_44, %c0_45] : memref<9x4x128xbf16, #tpu.memory_space<vmem>>, vector<1x4x128xbf16>
    %50 = vector.shape_cast %49 : vector<1x4x128xbf16> to vector<4x128xbf16>
    %cst_46 = arith.constant dense<0.000000e+00> : vector<192x128xf32>
    %51 = tpu.matmul %48, %50, %cst_46 {dimension_numbers = #tpu.dot_dimension_numbers<[1], [0], [0], [1], [0, 0, 1, 1], [], []>} : vector<192x4xbf16>, vector<4x128xbf16>, vector<192x128xf32> -> vector<192x128xf32>
    %52 = arith.addf %46, %51 : vector<192x128xf32>
    %53 = vector.shape_cast %52 : vector<192x128xf32> to vector<8x24x128xf32>
    %54 = vector.extract_strided_slice %53 {offsets = [0, 0, 0], sizes = [8, 16, 128], strides = [1, 1, 1]} : vector<8x24x128xf32> to vector<8x16x128xf32>
    %c0_47 = arith.constant 0 : index
    %c0_48 = arith.constant 0 : index
    %55 = vector.load %arg3[%c0_47, %c0_48] : memref<1x128xf32, #tpu.memory_space<vmem>>, vector<1x128xf32>
    %56 = vector.shape_cast %55 : vector<1x128xf32> to vector<1x1x128xf32>
    %57 = vector.broadcast %56 : vector<1x1x128xf32> to vector<8x16x128xf32>
    %58 = arith.addf %54, %57 : vector<8x16x128xf32>
    %cst_49 = arith.constant 0.000000e+00 : f32
    %59 = vector.broadcast %cst_49 : f32 to vector<8x16x128xf32>
    %60 = arith.maximumf %58, %59 : vector<8x16x128xf32>
    %61 = arith.truncf %60 : vector<8x16x128xf32> to vector<8x16x128xbf16>
    %c0_50 = arith.constant 0 : index
    %c0_51 = arith.constant 0 : index
    %c0_52 = arith.constant 0 : index
    %c0_53 = arith.constant 0 : index
    %62 = vector.load %arg4[%c0_50, %c0_51, %c0_52, %c0_53] : memref<1x8x16x128xbf16, #tpu.memory_space<vmem>>, vector<1x8x16x128xbf16>
    %63 = vector.shape_cast %62 : vector<1x8x16x128xbf16> to vector<8x16x128xbf16>
    %64 = vector.shape_cast %61 : vector<8x16x128xbf16> to vector<1x8x16x128xbf16>
    tpu.vector_store %arg4[%c0_50, %c0_51, %c0_52, %c0_53], %64 {strides = array<i32>} : memref<1x8x16x128xbf16, #tpu.memory_space<vmem>>, vector<1x8x16x128xbf16>,
    return
  }
  func.func @transform_0(%arg0: i32) -> (i32, i32, i32) {
    %c0_i32 = arith.constant 0 : i32
    %c0_i32_0 = arith.constant 0 : i32
    %c0_i32_1 = arith.constant 0 : i32
    return %arg0, %c0_i32, %c0_i32_0 : i32, i32, i32
  }
  func.func @transform_1(%arg0: i32) -> (i32, i32, i32) {
    %c0_i32 = arith.constant 0 : i32
    %c0_i32_0 = arith.constant 0 : i32
    %c0_i32_1 = arith.constant 0 : i32
    %c0_i32_2 = arith.constant 0 : i32
    return %c0_i32, %c0_i32_0, %c0_i32_1 : i32, i32, i32
  }
  func.func @transform_2(%arg0: i32) -> (i32, i32) {
    %c0_i32 = arith.constant 0 : i32
    %c0_i32_0 = arith.constant 0 : i32
    %c0_i32_1 = arith.constant 0 : i32
    return %c0_i32, %c0_i32_0 : i32, i32
  }
  func.func @transform_3(%arg0: i32) -> (i32, i32, i32, i32) {
    %c0_i32 = arith.constant 0 : i32
    %c0_i32_0 = arith.constant 0 : i32
    %c0_i32_1 = arith.constant 0 : i32
    %c0_i32_2 = arith.constant 0 : i32
    return %arg0, %c0_i32, %c0_i32_0, %c0_i32_1 : i32, i32, i32, i32
  }
}

</mosaic_0001>

<bundles_post_ra>
// kernel: tpu_custom_call.1
= control target key start
LH: loop header
LB: loop body
LE: loop exit
PB: predicated region body
PF: predicated region fallthrough
CT: control target
= control target key end

     0   :  { %8 = vsyncpa [#allocation3], 0  ;;  %s4366_s0 = inlined_call_operand.vmem [shape: bf16[4,264,4], index: 0, kind: input, shape index: {}]   ;;  %s4367_s1 = inlined_call_operand.vmem [shape: bf16[9,4,128], index: 1, kind: input, shape index: {}]   ;;  %s4368_s2 = inlined_call_operand.vmem [shape: f32[1,128], index: 2, kind: input, shape index: {}]   ;;  %s4369_s3 = inlined_call_operand.hbm [shape: bf16[4,8,16,128], index: 3, kind: output, shape index: {}]  }
   0x1   :  { %10 = vsyncpa [#allocation3 + $0x1], 0  ;;  %s3575_s12 = smov 0   ;;  %s3577_s13 = smov 0  }
   0x2   :  { %s3579_s14 = smov 0   ;;  %s3581_s15 = smov 0  }
   0x3 LB: > { %s3596_s16 = sadd.s32 4294967295, %s3550_s15   ;;  %s2745_s17 = sadd.s32 4294967294, %s3550_s15   ;;  %s3550_s15 = sphi %s3581_s15, %s4375_s15   ;;  %s3546_s14 = sphi %s3579_s14, %s4374_s14   ;;  %s3542_s13 = sphi %s3577_s13, %s4373_s13   ;;  %s3538_s12 = sphi %s3575_s12, %s4372_s12  }
   0x4   : > { %s3600_s18 = sadd.s32 1, %s3550_s15   ;;  %s91_s19 = sadd.s32 1, %s3546_s14 }
   0x5   : > { %s88_s20 = ssub.s32 %s3550_s15, %s3600_s18  ;;  %p101_p0 = scmp.ne.s32.totalorder %s3546_s14, %s3542_s13 }
   0x6   : > { %p89_p1 = scmp.eq.s32.totalorder %s88_s20, 0  ;;  %p102_p2 = scmp.eq.s32.totalorder %s3596_s16, 3 }
   0x7   : > { %p107_p3 = scmp.ne.s32.totalorder %s3542_s13, %s3538_s12  ;;  %p108_p4 = scmp.eq.s32.totalorder %s2745_s17, 3 }
   0x8   : > { %s3611_s21 = scalar_select %p89_p1, %s3546_s14, %s91_s19  }
   0x9   : > { %p3613_p5 = por %p102_p2, %p101_p0  ;;  %p3617_p6 = por %p108_p4, %p107_p3 }
   0xa   : > { %p2748_p7 = scmp.ge.s32.totalorder %s3550_s15, 1  ;;  %p140_p8 = scmp.lt.s32.totalorder %s3550_s15, 5 }
   0xc   : > { %p141_p9 = pnand %p2748_p7, %p140_p8 }
   0xd   : > { %p164_p10 = scmp.lt.s32.totalorder (!%p141_p9), %s3596_s16, 3 }
   0xe   : > { %144 = sbr.rel (%p141_p9) target bundleno = 465 (0x1d1), region = 32 }
  0x13   : > { %v2751_v0 = vld [vmem:[%s4367_s1 + $0x2] sm:$0x3]  ;;  %vm399_vm0 = vcmask 1041408   ;;  %v194_v2 = vld [vmem:[%s4367_s1] sm:$0x3]  ;;  %s165_s30 = scalar_select %p164_p10, %s3596_s16, 3 }
  0x14   : > { %3373 = vmatprep.subr.msk.bf16.mxu1 %vm399_vm0, %v2751_v0  ;;  %3372 = vmatprep.subr.msk.bf16.mxu0 %vm399_vm0, %v2751_v0  ;;  %v401_v1 = vsel %vm399_vm0, %v2751_v0, 0  ;;  %v2789_v3 = vld [vmem:[%s4367_s1 + $0x4] sm:$0x3]  ;;  %vm261_vm1 = vsmask.f32 7424  ;;  %vm362_vm2 = vcmask 31744  }
  0x15   : > { %3371 = vmatpush3.bf16.msra.mxu1 %v401_v1  ;;  %3137 = vmatpush3.bf16.msra.mxu0 %v401_v1  ;;  %s3382_s4 = smul.u32 132, %s165_s30  ;;  %v549_v8 = vsel %vm399_vm0, %v194_v2, 0  ;;  %v741_v16 = vsel %vm399_vm0, %v2789_v3, 0  ;;  %v3687_v33 = vld [vmem:[%s4367_s1 + $0x8] sm:$0x3]  ;;  %vm678_vm3 = vcmask 1046528  }
  0x16   : > { %3374 = vmatprep.subr.msk.bf16.mxu1 %vm399_vm0, %v194_v2  ;;  %3375 = vmatprep.subr.msk.bf16.mxu0 %vm399_vm0, %v2789_v3  ;;  %v3707_v45 = vld [vmem:[%s4367_s1 + $0x6] sm:$0x3] }
  0x17   : > { %s3642_s7 = scalar_lea.vmem %s4366_s0, %s3382_s4  ;;  %s161_s4 = sand.u32 1, %s3542_s13  }
  0x18   : > { %v170_v4 = vld [vmem:[%s3642_s7] sm:$0xf]  ;;  %v3646_v5 = vld [vmem:[%s3642_s7 + $0x4] sm:$0xf]  ;;  %v3652_v7 = vld [vmem:[%s3642_s7 + $0x8] sm:$0xff]   ;;  %s2749_s5 = sshll.u32 %s161_s4, 6 }
  0x19   : > { %v3649_v6 = vcombine.low %v170_v4, %v3646_v5  ;;  %v270_v11 = vshll.u32 %v3652_v7, 16  ;;  %v274_v12 = vshrl.u32 %v3652_v7, 16  ;;  %v3660_v13 = vld [vmem:[%s3642_s7 + $0x30] sm:$0xff]   ;;  %v3663_v14 = vld [vmem:[%s3642_s7 + $0x38] sm:$0xff]   ;;  %v3675_v24 = vld [vmem:[%s3642_s7 + $0x40] sm:$0xff]   ;;  %s4269_s6 = scalar_lea.vmem [#allocation2], %s2749_s5 }
  0x1a   : > { %v3666_v15 = vld [vmem:[%s3642_s7 + $0x10] sm:$0xff]   ;;  %v310_v19 = vshll.u32 %v3660_v13, 16  ;;  %v314_v20 = vshrl.u32 %v3660_v13, 16  ;;  %v318_v21 = vshll.u32 %v3663_v14, 16  ;;  %v322_v22 = vshrl.u32 %v3663_v14, 16  ;;  %v3680_v28 = vld [vmem:[%s3642_s7 + $0x18] sm:$0xff]  }
  0x1b   : > { %v263_v9 = vshrl.u32 %v3649_v6, 16  ;;  %v265_v10 = vshll.u32 %v3649_v6, 16  ;;  %v272_v18 = vrot.slane %v270_v11, 1  ;;  %v278_v23 = vshll.u32 %v3666_v15, 16  ;;  %v3693_v37 = vld [vmem:[%s3642_s7 + $0x48] sm:$0xff]   ;;  %v3697_v39 = vld [vmem:[%s3642_s7 + $0x20] sm:$0xff]  }
  0x1c   : > { %v3677_v27 = vrot.slane %v310_v19, 1  ;;  %v320_v29 = vrot.slane %v318_v21, 1  ;;  %v326_v31 = vshll.u32 %v3675_v24, 16  ;;  %v282_v32 = vshrl.u32 %v3666_v15, 16  ;;  %v3702_v44 = vld [vmem:[%s3642_s7 + $0x50] sm:$0xff]   ;;  %v3714_v50 = vld [vmem:[%s3642_s7 + $0x28] sm:$0xff]  }
  0x1d   : > { %v267_v17 = vrot.slane %v265_v10, 1  ;;  %v276_v26 = vor.u32 %v274_v12, %v272_v18  ;;  %v280_v30 = vrot.slane %v278_v23, 1  ;;  %v286_v36 = vshll.u32 %v3680_v28, 16  ;;  %v3729_v62 = vld [vmem:[%s3642_s7 + $0x58] sm:$0xff]   ;;  %v672_v3 = vld [vmem:[%s3642_s7] sm:$0xe] }
  0x1e   : > { %v316_v35 = vor.u32 %v314_v20, %v3677_v27  ;;  %v330_v38 = vshrl.u32 %v3675_v24, 16  ;;  %v324_v40 = vor.u32 %v322_v22, %v320_v29  ;;  %v328_v42 = vrot.slane %v326_v31, 1  ;;  %v3740_v11 = vld [vmem:[%s3642_s7 + $0x60] ss:$0 sps:$4 sm:$0x11]   ;;  %s2683_s8 = sshll.u32 %s4269_s6, 4  ;;  %s4321_s8 = int_to_ptr.vmem [resolvable:$true] %s2683_s8 }
  0x1f   : > { %v268_v25 = vor.u32 %v267_v17, %v263_v9  ;;  %v281_v41 = vsel %vm261_vm1, %v276_v26, %v280_v30  ;;  %v284_v43 = vor.u32 %v282_v32, %v280_v30  ;;  %v288_v47 = vrot.slane %v286_v36, 1  ;;  %s4326_s17 = scalar_lea.sflag [#allocation3], %s161_s4  ;;  %s3490_s19 = scalar_lea.vmem %s4321_s8, 1024 }
  0x20   : > { %v321_v46 = vsel %vm261_vm1, %v316_v35, %v320_v29  ;;  %v334_v48 = vshll.u32 %v3693_v37, 16  ;;  %v290_v49 = vshrl.u32 %v3680_v28, 16  ;;  %v329_v51 = vsel %vm261_vm1, %v324_v40, %v328_v42  ;;  %p3491_p11 = scmp.ne.s32.totalorder %s4321_s8, %s3490_s19 }
  0x21   : > { %v273_v34 = vsel %vm261_vm1, %v268_v25, %v272_v18  ;;  %3150 = vmatprep.mubr.msk.bf16.mxu1 %vm362_vm2, %v321_v46  ;;  %v332_v52 = vor.u32 %v330_v38, %v328_v42  ;;  %v294_v53 = vshll.u32 %v3697_v39, 16  ;;  %v338_v54 = vshrl.u32 %v3693_v37, 16 }
  0x22   : > { %3138 = vmatprep.mubr.msk.bf16.mxu0 %vm362_vm2, %v273_v34  ;;  %3151 = vmatmul.mubr.msk.bf16.vlgmr.msra.gmra.mxu1 %vm362_vm2, %v329_v51  ;;  %v289_v55 = vsel %vm261_vm1, %v284_v43, %v288_v47  ;;  %v336_v56 = vrot.slane %v334_v48, 1  ;;  %v292_v57 = vor.u32 %v290_v49, %v288_v47  ;;  %v342_v58 = vshll.u32 %v3702_v44, 16  ;;  %v1142_v51 = vld [vmem:[%s3642_s7 + $0xc] sm:$0xf]  ;;  %p3492_p12 = pnand %p3491_p11, %p3613_p5 }
  0x23   : > { %3139 = vmatmul.mubr.msk.bf16.vlgmr.msra.gmra.mxu0 %vm362_vm2, %v281_v41  ;;  %3163 = vmatpush3.bf16.msra.mxu1 %v549_v8  ;;  %v296_v59 = vrot.slane %v294_v53, 1  ;;  %v298_v60 = vshrl.u32 %v3697_v39, 16  ;;  %v302_v61 = vshll.u32 %v3714_v50, 16  ;;  %v346_v2 = vshrl.u32 %v3702_v44, 16  ;;  %v3772_v41 = vld [vmem:[%s4367_s1 + $0xc] sm:$0x3] }
  0x24   : > { %3189 = vmatpush3.bf16.msra.mxu0 %v741_v16  ;;  %3142 = vmatprep.mubr.msk.bf16.mxu0 %vm362_vm2, %v289_v55  ;;  %v337_v63 = vsel %vm261_vm1, %v332_v52, %v336_v56  ;;  %v340_v0 = vor.u32 %v338_v54, %v336_v56  ;;  %v344_v1 = vrot.slane %v342_v58, 1  ;;  %v350_v10 = vshll.u32 %v3729_v62, 16  ;;  %v3824_v55 = vld [vmem:[%s3642_s7 + $0x14] sm:$0xff]   ;;  %p3493_p13 = pneg %p3492_p12 }
  0x25   : > { %3377 = vmatprep.subr.msk.bf16.mxu0 %vm399_vm0, %v3687_v33  ;;  %3376 = vmatprep.subr.msk.bf16.mxu1 %vm399_vm0, %v3707_v45  ;;  %v297_v4 = vsel %vm261_vm1, %v292_v57, %v296_v59  ;;  %v300_v8 = vor.u32 %v298_v60, %v296_v59  ;;  %v304_v9 = vrot.slane %v302_v61, 1  ;;  %v306_v17 = vshrl.u32 %v3714_v50, 16 }
  0x26   : > { %3154 = vmatprep.mubr.msk.bf16.mxu1 %vm362_vm2, %v337_v63  ;;  %v345_v12 = vsel %vm261_vm1, %v340_v0, %v344_v1  ;;  %v348_v16 = vor.u32 %v346_v2, %v344_v1  ;;  %v354_v18 = vshrl.u32 %v3729_v62, 16  ;;  %v352_v20 = vrot.slane %v350_v10, 1  ;;  %v3836_v63 = vld [vmem:[%s3642_s7 + $0x1c] sm:$0xff]   ;;  %v3843_v1 = vld [vmem:[%s3642_s7 + $0x24] sm:$0xff]   ;;  %v3438_v10 = vld [vmem:[%s3642_s7 + $0xc] sm:$0xff]  }
  0x27   : > { %v305_v19 = vsel %vm261_vm1, %v300_v8, %v304_v9  ;;  %v358_v21 = vshll.u32 %v3740_v11, 16  ;;  %v2790_v22 = vcombine.low %v672_v3, %v3646_v5  ;;  %v308_v25 = vor.u32 %v306_v17, %v304_v9 }
  0x28   : > { %v353_v23 = vsel %vm261_vm1, %v348_v16, %v352_v20  ;;  %v680_v29 = vrot.slane %v3652_v7, 1  ;;  %v356_v30 = vor.u32 %v354_v18, %v352_v20  ;;  %v682_v35 = vrot.slane %v3666_v15, 1  ;;  %v3862_v18 = vld [vmem:[%s3642_s7 + $0x34] sm:$0xff]  }
  0x29   : > { %v679_v26 = vrot.slane %v2790_v22, 1  ;;  %v360_v31 = vrot.slane %v358_v21, 1  ;;  %v313_v5 = vsel %vm261_vm1, %v308_v25, %v3677_v27  ;;  %v684_v36 = vrot.slane %v3680_v28, 1  ;;  %v3441_v22 = vld [vmem:[%s3642_s7 + $0x14] sm:$0xff]  }
  0x2a   : > { %3155 = vmatmul.mubr.msk.bf16.gmra.mxu1 %vm362_vm2, %v345_v12  ;;  %v683_v38 = vsel %vm678_vm3, %v680_v29, %v682_v35  ;;  %v1369_v27 = vsel %vm399_vm0, %v3687_v33, 0  ;;  %v1003_v42 = vsel %vm399_vm0, %v3707_v45, 0  ;;  %v686_v33 = vrot.slane %v3697_v39, 1  ;;  %v3856_v12 = vld [vmem:[%s3642_s7 + $0x2c] sm:$0xff]  }
  0x2b   : > { %3143 = vmatmul.mubr.msk.bf16.gmra.mxu0 %vm362_vm2, %v297_v4  ;;  %3158 = vmatprep.mubr.msk.bf16.mxu1 %vm362_vm2, %v353_v23  ;;  %v681_v32 = vsel %vm678_vm3, %v679_v26, %v680_v29  ;;  %v361_v34 = vsel %vm261_vm1, %v356_v30, %v360_v31  ;;  %v685_v40 = vsel %vm678_vm3, %v682_v35, %v684_v36  ;;  %v688_v43 = vrot.slane %v3714_v50, 1  ;;  %v3443_v29 = vld [vmem:[%s3642_s7 + $0x1c] sm:$0xff]   ;;  %v3878_v30 = vld [vmem:[%s4367_s1 + $0x10] sm:$0x3]  ;;  %v3890_v35 = vld [vmem:[%s4367_s1 + $0xe] sm:$0x3] }
  0x2c   : > { %3146 = vmatprep.mubr.msk.bf16.mxu0 %vm362_vm2, %v305_v19  ;;  %v687_v45 = vsel %vm678_vm3, %v684_v36, %v686_v33  ;;  %v692_v47 = vrot.slane %v3663_v14, 1  ;;  %v694_v49 = vrot.slane %v3675_v24, 1  ;;  %v1240_v61 = vshll.u32 %v3824_v55, 16 }
  0x2d   : > { %v689_v46 = vsel %vm678_vm3, %v686_v33, %v688_v43  ;;  %v1248_v2 = vshll.u32 %v3836_v63, 16  ;;  %v1244_v4 = vshrl.u32 %v3824_v55, 16  ;;  %v1252_v9 = vshrl.u32 %v3836_v63, 16 }
  0x2e   : > { %v695_v52 = vsel %vm678_vm3, %v692_v47, %v694_v49  ;;  %v1242_v0 = vrot.slane %v1240_v61, 1  ;;  %v1264_v19 = vshll.u32 %v3856_v12, 16  ;;  %v1260_v21 = vshrl.u32 %v3843_v1, 16 }
  0x2f   : > { %v1838_v23 = vsel %vm399_vm0, %v3772_v41, 0  ;;  %v1272_v26 = vshll.u32 %v3862_v18, 16 }
  0x32   : > { %3159 = vmatmul.mubr.msk.bf16.gmra.mxu1 %vm362_vm2, %v361_v34 }
  0x33   : > { %3147 = vmatmul.mubr.msk.bf16.gmra.mxu0 %vm362_vm2, %v313_v5  ;;  %3164 = vmatprep.mubr.msk.bf16.mxu1 %vm362_vm2, %v3649_v6  ;;  %v3780_v6 = vld [vmem:[%s4367_s1 + $0xa] sm:$0x3]  ;;  %v1266_v5 = vrot.slane %v1264_v19, 1 }
  0x34   : > { %3190 = vmatprep.mubr.msk.bf16.mxu0 %vm362_vm2, %v681_v32  ;;  %v1576_v31 = vsel %vm399_vm0, %v3780_v6, 0  ;;  %v3884_v32 = vld [vmem:[%s3642_s7 + $0x3c] sm:$0xff]  }
  0x3a   : > { %3165 = vmatmul.mubr.msk.bf16.vlgmr.msra.gmra.mxu1 %vm362_vm2, %v3652_v7  ;;  %v690_v7 = vrot.slane %v3660_v13, 1 }
  0x3b   : > { %3191 = vmatmul.mubr.msk.bf16.vlgmr.msra.gmra.mxu0 %vm362_vm2, %v683_v38  ;;  %3215 = vmatpush3.bf16.msra.mxu1 %v1003_v42  ;;  %v1274_v38 = vrot.slane %v1272_v26, 1  ;;  %v1276_v42 = vshrl.u32 %v3862_v18, 16  ;;  %v3459_v26 = vld [vmem:[%s3642_s7 + $0x5c] sm:$0xff]  }
  0x3c   : > { %3241 = vmatpush3.bf16.msra.mxu0 %v1369_v27  ;;  %3194 = vmatprep.mubr.msk.bf16.mxu0 %vm362_vm2, %v685_v40  ;;  %v693_v48 = vsel %vm678_vm3, %v690_v7, %v692_v47  ;;  %v3894_v27 = vld [vmem:[%s3642_s7 + $0x44] sm:$0xff]   ;;  %v1280_v40 = vshll.u32 %v3884_v32, 16  ;;  %v3911_v47 = vld [vmem:[%s3642_s7 + $0x4c] sm:$0xff]  }
  0x3d   : > { %3379 = vmatprep.subr.msk.bf16.mxu0 %vm399_vm0, %v3772_v41  ;;  %3168 = vmatprep.mubr.msk.bf16.mxu1 %vm362_vm2, %v3666_v15  ;;  %v691_v15 = vsel %vm678_vm3, %v688_v43, %v690_v7  ;;  %v1284_v43 = vshrl.u32 %v3884_v32, 16 }
  0x3e   : > { %3378 = vmatprep.subr.msk.bf16.mxu1 %vm399_vm0, %v3780_v6  ;;  %v3445_v6 = vld [vmem:[%s3642_s7 + $0x24] sm:$0xff]   ;;  %v1282_v7 = vrot.slane %v1280_v40, 1  ;;  %v3464_v40 = vld [vmem:[%s3642_s7 + $0x18] sm:$0xff]  }
  0x42   : > { %3169 = vmatmul.mubr.msk.bf16.gmra.mxu1 %vm362_vm2, %v3680_v28  ;;  %v696_v28 = vrot.slane %v3693_v37, 1 }
  0x43   : > { %3195 = vmatmul.mubr.msk.bf16.gmra.mxu0 %vm362_vm2, %v687_v45  ;;  %3172 = vmatprep.mubr.msk.bf16.mxu1 %vm362_vm2, %v3697_v39  ;;  %v3815_v39 = vld [vmem:[%s3642_s7 + $0x10] sm:$0xf]  ;;  %v1288_v45 = vshll.u32 %v3894_v27, 16 }
  0x44   : > { %3198 = vmatprep.mubr.msk.bf16.mxu0 %vm362_vm2, %v689_v46  ;;  %v697_v53 = vsel %vm678_vm3, %v694_v49, %v696_v28  ;;  %v2829_v54 = vcombine.low %v1142_v51, %v3815_v39  ;;  %v3447_v46 = vld [vmem:[%s3642_s7 + $0x2c] sm:$0xff]   ;;  %v3916_v51 = vld [vmem:[%s3642_s7 + $0x54] sm:$0xff]  }
  0x45   : > { %v1290_v49 = vrot.slane %v1288_v45, 1 }
  0x46   : > { %v1235_v56 = vshll.u32 %v2829_v54, 16  ;;  %v1233_v59 = vshrl.u32 %v2829_v54, 16  ;;  %v3449_v54 = vld [vmem:[%s3642_s7 + $0x34] sm:$0xff]  }
  0x48   : > { %v1237_v60 = vrot.slane %v1235_v56, 1  ;;  %v1304_v56 = vshll.u32 %v3916_v51, 16 }
  0x4a   : > { %3173 = vmatmul.mubr.msk.bf16.gmra.mxu1 %vm362_vm2, %v3714_v50  ;;  %v698_v50 = vrot.slane %v3702_v44, 1 }
  0x4b   : > { %3199 = vmatmul.mubr.msk.bf16.gmra.mxu0 %vm362_vm2, %v691_v15  ;;  %3176 = vmatprep.mubr.msk.bf16.mxu1 %vm362_vm2, %v3660_v13  ;;  %v700_v13 = vrot.slane %v3729_v62, 1  ;;  %v1278_v15 = vor.u32 %v1276_v42, %v1274_v38  ;;  %v1517_v42 = vrot.slane %v3836_v63, 1  ;;  %v1521_v63 = vrot.slane %v3856_v12, 1 }
  0x4c   : > { %3202 = vmatprep.mubr.msk.bf16.mxu0 %vm362_vm2, %v693_v48  ;;  %v699_v57 = vsel %vm678_vm3, %v696_v28, %v698_v50  ;;  %v1286_v48 = vor.u32 %v1284_v43, %v1282_v7  ;;  %v1296_v28 = vshll.u32 %v3911_v47, 16  ;;  %v2411_v43 = vsel %vm399_vm0, %v3878_v30, 0 }
  0x4d   : > { %v701_v58 = vsel %vm678_vm3, %v698_v50, %v700_v13 }
  0x4e   : > { %v1291_v50 = vsel %vm261_vm1, %v1286_v48, %v1290_v49 }
  0x52   : > { %3177 = vmatmul.mubr.msk.bf16.gmra.mxu1 %vm362_vm2, %v3663_v14  ;;  %v702_v14 = vrot.slane %v3740_v11, 1  ;;  %v1250_v11 = vrot.slane %v1248_v2, 1 }
  0x53   : > { %3203 = vmatmul.mubr.msk.bf16.gmra.mxu0 %vm362_vm2, %v695_v52  ;;  %3180 = vmatprep.mubr.msk.bf16.mxu1 %vm362_vm2, %v3675_v24  ;;  %v1238_v24 = vor.u32 %v1237_v60, %v1233_v59  ;;  %v1283_v52 = vsel %vm261_vm1, %v1278_v15, %v1282_v7  ;;  %v3929_v59 = vld [vmem:[%s3642_s7 + $0x5c] sm:$0xff]  }
  0x54   : > { %3206 = vmatprep.mubr.msk.bf16.mxu0 %vm362_vm2, %v697_v53  ;;  %v703_v3 = vsel %vm678_vm3, %v700_v13, %v702_v14  ;;  %v1254_v16 = vor.u32 %v1252_v9, %v1250_v11  ;;  %v1292_v53 = vshrl.u32 %v3894_v27, 16  ;;  %v1300_v13 = vshrl.u32 %v3911_v47, 16  ;;  %v3468_v15 = vld [vmem:[%s3642_s7 + $0x38] sm:$0xff]  }
  0x55   : > { %v1243_v8 = vsel %vm261_vm1, %v1238_v24, %v1242_v0  ;;  %v1306_v14 = vrot.slane %v1304_v56, 1  ;;  %v3934_v24 = vld [vmem:[%s3642_s7 + $0x64] sm:$0xff]   ;;  %v1316_v9 = vshrl.u32 %v3929_v59, 16  ;;  %v1978_v56 = vld [vmem:[%s3642_s7 + $0x1c] sm:$0xf] }
  0x56   : > { %v1294_v60 = vor.u32 %v1292_v53, %v1290_v49  ;;  %v1527_v49 = vrot.slane %v3894_v27, 1  ;;  %v1531_v27 = vrot.slane %v3916_v51, 1 }
  0x5a   : > { %3181 = vmatmul.mubr.msk.bf16.gmra.mxu1 %vm362_vm2, %v3693_v37  ;;  %v1256_v37 = vshll.u32 %v3843_v1, 16 }
  0x5b   : > { %3207 = vmatmul.mubr.msk.bf16.gmra.mxu0 %vm362_vm2, %v699_v57  ;;  %3184 = vmatprep.mubr.msk.bf16.mxu1 %vm362_vm2, %v3702_v44  ;;  %v1246_v44 = vor.u32 %v1244_v4, %v1242_v0  ;;  %v3451_v57 = vld [vmem:[%s3642_s7 + $0x3c] sm:$0xff]   ;;  %v1312_v0 = vshll.u32 %v3929_v59, 16  ;;  %v3453_v4 = vld [vmem:[%s3642_s7 + $0x44] sm:$0xff]  }
  0x5c   : > { %3210 = vmatprep.mubr.msk.bf16.mxu0 %vm362_vm2, %v701_v58  ;;  %v1258_v17 = vrot.slane %v1256_v37, 1  ;;  %v1298_v58 = vrot.slane %v1296_v28, 1  ;;  %v1320_v37 = vshll.u32 %v3934_v24, 16  ;;  %v3470_v28 = vld [vmem:[%s3642_s7 + $0x48] sm:$0xff]  }
  0x5d   : > { %v1251_v20 = vsel %vm261_vm1, %v1246_v44, %v1250_v11  ;;  %v1314_v11 = vrot.slane %v1312_v0, 1  ;;  %v3477_v0 = vld [vmem:[%s3642_s7 + $0x20] sm:$0xff]  }
  0x5e   : > { %v1259_v25 = vsel %vm261_vm1, %v1254_v16, %v1258_v17  ;;  %v1262_v34 = vor.u32 %v1260_v21, %v1258_v17  ;;  %v1302_v61 = vor.u32 %v1300_v13, %v1298_v58  ;;  %v1299_v2 = vsel %vm261_vm1, %v1294_v60, %v1298_v58  ;;  %v3948_v16 = vld [vmem:[%s3642_s7 + $0x6c] ss:$0 sps:$4 sm:$0x11]   ;;  %v1977_v13 = vld [vmem:[%s3642_s7 + $0x18] sm:$0xf] }
  0x5f   : > { %v1318_v17 = vor.u32 %v1316_v9, %v1314_v11  ;;  %v1322_v19 = vrot.slane %v1320_v37, 1  ;;  %v1324_v21 = vshrl.u32 %v3934_v24, 16  ;;  %v2894_v60 = vcombine.low %v1977_v13, %v1978_v56 }
  0x60   : > { %v1267_v41 = vsel %vm261_vm1, %v1262_v34, %v1266_v5 }
  0x61   : > { %v2068_v37 = vshrl.u32 %v2894_v60, 16 }
  0x62   : > { %3185 = vmatmul.mubr.msk.bf16.gmra.mxu1 %vm362_vm2, %v3729_v62  ;;  %v1268_v62 = vshrl.u32 %v3856_v12, 16  ;;  %v1525_v12 = vrot.slane %v3884_v32, 1  ;;  %v1529_v32 = vrot.slane %v3911_v47, 1  ;;  %v1533_v47 = vrot.slane %v3929_v59, 1 }
  0x63   : > { %3211 = vmatmul.mubr.msk.bf16.gmra.mxu0 %vm362_vm2, %v703_v3  ;;  %3216 = vmatprep.mubr.msk.bf16.mxu1 %vm362_vm2, %v3438_v10  ;;  %v1308_v3 = vshrl.u32 %v3916_v51, 16  ;;  %v3455_v10 = vld [vmem:[%s3642_s7 + $0x4c] sm:$0xff]   ;;  %v2343_v51 = vld [vmem:[%s3642_s7 + $0x18] sm:$0xe]  ;;  %v2075_v59 = vshll.u32 %v3477_v0, 16 }
  0x64   : > { %3242 = vmatprep.mubr.msk.bf16.mxu0 %vm362_vm2, %v1243_v8  ;;  %v1270_v36 = vor.u32 %v1268_v62, %v1266_v5  ;;  %v1307_v8 = vsel %vm261_vm1, %v1302_v61, %v1306_v14  ;;  %v1323_v62 = vsel %vm261_vm1, %v1318_v17, %v1322_v19  ;;  %v1528_v53 = vsel %vm678_vm3, %v1525_v12, %v1527_v49  ;;  %v3473_v61 = vld [vmem:[%s3642_s7 + $0x60] sm:$0xff]  }
  0x65   : > { %v1310_v44 = vor.u32 %v1308_v3, %v1306_v14  ;;  %v1532_v58 = vsel %vm678_vm3, %v1529_v32, %v1531_v27  ;;  %v1535_v14 = vrot.slane %v3934_v24, 1  ;;  %v3474_v3 = vld [vmem:[%s3642_s7 + $0x68] sm:$0xff]   ;;  %v1537_v17 = vrot.slane %v3948_v16, 1 }
  0x66   : > { %v1275_v33 = vsel %vm261_vm1, %v1270_v36, %v1274_v38  ;;  %v1515_v36 = vrot.slane %v3824_v55, 1  ;;  %v1519_v55 = vrot.slane %v3843_v1, 1  ;;  %v3467_v1 = vld [vmem:[%s3642_s7 + $0x30] sm:$0xff]  }
  0x67   : > { %v1536_v9 = vsel %vm678_vm3, %v1533_v47, %v1535_v14 }
  0x68   : > { %v1518_v45 = vsel %vm678_vm3, %v1515_v36, %v1517_v42  ;;  %v1520_v7 = vsel %vm678_vm3, %v1517_v42, %v1519_v55  ;;  %v3482_v42 = vld [vmem:[%s3642_s7 + $0x40] sm:$0xff]  }
  0x6a   : > { %3217 = vmatmul.mubr.msk.bf16.vlgmr.msra.gmra.mxu1 %vm362_vm2, %v3441_v22  ;;  %v1328_v22 = vshll.u32 %v3948_v16, 16 }
  0x6b   : > { %3243 = vmatmul.mubr.msk.bf16.vlgmr.msra.gmra.mxu0 %vm362_vm2, %v1251_v20  ;;  %3267 = vmatpush3.bf16.msra.mxu1 %v1576_v31  ;;  %v1315_v20 = vsel %vm261_vm1, %v1310_v44, %v1314_v11  ;;  %v1326_v31 = vor.u32 %v1324_v21, %v1322_v19  ;;  %v2350_v11 = vrot.slane %v3477_v0, 1  ;;  %v3479_v44 = vld [vmem:[%s3642_s7 + $0x28] sm:$0xff]   ;;  %v3475_v19 = vld [vmem:[%s3642_s7 + $0x70] sm:$0xff]   ;;  %v2077_v21 = vrot.slane %v2075_v59, 1 }
  0x6c   : > { %3293 = vmatpush3.bf16.msra.mxu0 %v1838_v23  ;;  %3246 = vmatprep.mubr.msk.bf16.mxu0 %vm362_vm2, %v1259_v25  ;;  %v1508_v23 = vld [vmem:[%s3642_s7 + $0xc] sm:$0xe]  ;;  %v3457_v25 = vld [vmem:[%s3642_s7 + $0x54] sm:$0xff]   ;;  %v1330_v5 = vrot.slane %v1328_v22, 1  ;;  %v2352_v16 = vrot.slane %v3479_v44, 1 }
  0x6d   : > { %3381 = vmatprep.subr.msk.bf16.mxu0 %vm399_vm0, %v3878_v30  ;;  %3220 = vmatprep.mubr.msk.bf16.mxu1 %vm362_vm2, %v3443_v29  ;;  %v2855_v29 = vcombine.low %v1508_v23, %v3815_v39  ;;  %v1523_v30 = vrot.slane %v3862_v18, 1  ;;  %v3469_v18 = vld [vmem:[%s3642_s7 + $0x40] sm:$0xff]   ;;  %v3480_v22 = vld [vmem:[%s3642_s7 + $0x30] sm:$0xff]  }
  0x6e   : > { %3380 = vmatprep.subr.msk.bf16.mxu1 %vm399_vm0, %v3890_v35  ;;  %v1331_v38 = vsel %vm261_vm1, %v1326_v31, %v1330_v5  ;;  %v2087_v31 = vshrl.u32 %v3479_v44, 16  ;;  %v2091_v5 = vshll.u32 %v3480_v22, 16 }
  0x6f   : > { %v1514_v34 = vrot.slane %v2855_v29, 1  ;;  %v1524_v48 = vsel %vm678_vm3, %v1521_v63, %v1523_v30 }
  0x71   : > { %v1516_v39 = vsel %vm678_vm3, %v1514_v34, %v1515_v36  ;;  %v2354_v36 = vrot.slane %v3480_v22, 1 }
  0x72   : > { %3221 = vmatmul.mubr.msk.bf16.gmra.mxu1 %vm362_vm2, %v3445_v6  ;;  %v3465_v6 = vld [vmem:[%s3642_s7 + $0x20] sm:$0xff]  }
  0x73   : > { %3247 = vmatmul.mubr.msk.bf16.gmra.mxu0 %vm362_vm2, %v1267_v41  ;;  %3224 = vmatprep.mubr.msk.bf16.mxu1 %vm362_vm2, %v3447_v46  ;;  %v3461_v41 = vld [vmem:[%s3642_s7 + $0x64] sm:$0xff]   ;;  %v2204_v46 = vsel %vm399_vm0, %v3890_v35, 0  ;;  %v1522_v35 = vsel %vm678_vm3, %v1519_v55, %v1521_v63  ;;  %v2355_v55 = vsel %vm678_vm3, %v2352_v16, %v2354_v36  ;;  %v2107_v63 = vshll.u32 %v3482_v42, 16 }
  0x74   : > { %3250 = vmatprep.mubr.msk.bf16.mxu0 %vm362_vm2, %v1275_v33  ;;  %v3466_v33 = vld [vmem:[%s3642_s7 + $0x28] sm:$0xff]  }
  0x7a   : > { %3225 = vmatmul.mubr.msk.bf16.gmra.mxu1 %vm362_vm2, %v3449_v54  ;;  %v3471_v54 = vld [vmem:[%s3642_s7 + $0x50] sm:$0xff]  }
  0x7b   : > { %3251 = vmatmul.mubr.msk.bf16.gmra.mxu0 %vm362_vm2, %v1283_v52  ;;  %3228 = vmatprep.mubr.msk.bf16.mxu1 %vm362_vm2, %v3451_v57  ;;  %v1526_v52 = vsel %vm678_vm3, %v1523_v30, %v1525_v12  ;;  %v1530_v57 = vsel %vm678_vm3, %v1527_v49, %v1529_v32  ;;  %v3484_v49 = vld [vmem:[%s3642_s7 + $0x50] sm:$0xff]  }
  0x7c   : > { %3254 = vmatprep.mubr.msk.bf16.mxu0 %vm362_vm2, %v1291_v50  ;;  %v3472_v50 = vld [vmem:[%s3642_s7 + $0x58] sm:$0xff]   ;;  %v2123_v13 = vshll.u32 %v3484_v49, 16 }
  0x82   : > { %3229 = vmatmul.mubr.msk.bf16.gmra.mxu1 %vm362_vm2, %v3453_v4  ;;  %v2920_v4 = vcombine.low %v2343_v51, %v1978_v56 }
  0x83   : > { %3255 = vmatmul.mubr.msk.bf16.gmra.mxu0 %vm362_vm2, %v1299_v2  ;;  %3232 = vmatprep.mubr.msk.bf16.mxu1 %vm362_vm2, %v3455_v10  ;;  %v2070_v2 = vshll.u32 %v2894_v60, 16  ;;  %v3485_v60 = vld [vmem:[%s3642_s7 + $0x58] sm:$0xff]  }
  0x84   : > { %3258 = vmatprep.mubr.msk.bf16.mxu0 %vm362_vm2, %v1307_v8  ;;  %v1534_v8 = vsel %vm678_vm3, %v1531_v27, %v1533_v47  ;;  %v2349_v24 = vrot.slane %v2920_v4, 1  ;;  %v2364_v59 = vrot.slane %v3485_v60, 1 }
  0x85   : > { %v2072_v10 = vrot.slane %v2070_v2, 1 }
  0x86   : > { %v2351_v23 = vsel %vm678_vm3, %v2349_v24, %v2350_v11 }
  0x8a   : > { %3233 = vmatmul.mubr.msk.bf16.gmra.mxu1 %vm362_vm2, %v3457_v25  ;;  %v2083_v25 = vshll.u32 %v3479_v44, 16  ;;  %v3487_v44 = vld [vmem:[%s3642_s7 + $0x68] sm:$0xff]  }
  0x8b   : > { %3259 = vmatmul.mubr.msk.bf16.gmra.mxu0 %vm362_vm2, %v1315_v20  ;;  %3236 = vmatprep.mubr.msk.bf16.mxu1 %vm362_vm2, %v3459_v26  ;;  %v2073_v20 = vor.u32 %v2072_v10, %v2068_v37  ;;  %v2079_v26 = vshrl.u32 %v3477_v0, 16  ;;  %v2135_v37 = vshrl.u32 %v3485_v60, 16 }
  0x8c   : > { %3262 = vmatprep.mubr.msk.bf16.mxu0 %vm362_vm2, %v1323_v62  ;;  %v1538_v62 = vsel %vm678_vm3, %v1535_v14, %v1537_v17  ;;  %v2085_v34 = vrot.slane %v2083_v25, 1  ;;  %v3486_v14 = vld [vmem:[%s3642_s7 + $0x60] sm:$0xff]   ;;  %v2147_v25 = vshll.u32 %v3487_v44, 16 }
  0x8d   : > { %v2078_v29 = vsel %vm261_vm1, %v2073_v20, %v2077_v21  ;;  %v2139_v10 = vshll.u32 %v3486_v14, 16 }
  0x8f   : > { %v2141_v20 = vrot.slane %v2139_v10, 1 }
  0x92   : > { %3237 = vmatmul.mubr.msk.bf16.gmra.mxu1 %vm362_vm2, %v3461_v41  ;;  %v2089_v41 = vor.u32 %v2087_v31, %v2085_v34 }
  0x93   : > { %3263 = vmatmul.mubr.msk.bf16.gmra.mxu0 %vm362_vm2, %v1331_v38  ;;  %3268 = vmatprep.mubr.msk.bf16.mxu1 %vm362_vm2, %v1516_v39  ;;  %v3481_v38 = vld [vmem:[%s3642_s7 + $0x38] sm:$0xff]   ;;  %v2093_v39 = vrot.slane %v2091_v5, 1  ;;  %v2151_v5 = vshrl.u32 %v3487_v44, 16 }
  0x94   : > { %3294 = vmatprep.mubr.msk.bf16.mxu0 %vm362_vm2, %v3464_v40  ;;  %v2081_v40 = vor.u32 %v2079_v26, %v2077_v21  ;;  %v3488_v21 = vld [vmem:[%s3642_s7 + $0x70] sm:$0xff]   ;;  %v2143_v26 = vshrl.u32 %v3486_v14, 16 }
  0x9a   : > { %3269 = vmatmul.mubr.msk.bf16.vlgmr.msra.gmra.mxu1 %vm362_vm2, %v1518_v45  ;;  %v2095_v45 = vshrl.u32 %v3480_v22, 16 }
  0x9b   : > { %3295 = vmatmul.mubr.msk.bf16.vlgmr.msra.gmra.mxu0 %vm362_vm2, %v3465_v6  ;;  %3319 = vmatpush3.bf16.msra.mxu1 %v2204_v46  ;;  %v2353_v6 = vsel %vm678_vm3, %v2350_v11, %v2352_v16  ;;  %v2094_v46 = vsel %vm261_vm1, %v2089_v41, %v2093_v39  ;;  %v2366_v11 = vrot.slane %v3486_v14, 1  ;;  %v2155_v16 = vshll.u32 %v3488_v21, 16 }
  0x9c   : > { %3345 = vmatpush3.bf16.msra.mxu0 %v2411_v43  ;;  %3298 = vmatprep.mubr.msk.bf16.mxu0 %vm362_vm2, %v3466_v33  ;;  %v2099_v33 = vshll.u32 %v3481_v38, 16  ;;  %v2086_v43 = vsel %vm261_vm1, %v2081_v40, %v2085_v34  ;;  %v2368_v34 = vrot.slane %v3487_v44, 1  ;;  %v2149_v40 = vrot.slane %v2147_v25, 1 }
  0x9d   : > { %3272 = vmatprep.mubr.msk.bf16.mxu1 %vm362_vm2, %v1520_v7  ;;  %v2103_v7 = vshrl.u32 %v3481_v38, 16  ;;  %v2370_v41 = vrot.slane %v3488_v21, 1 }
  0x9e   : > { %v2101_v30 = vrot.slane %v2099_v33, 1  ;;  %v2153_v33 = vor.u32 %v2151_v5, %v2149_v40 }
  0xa0   : > { %v2105_v12 = vor.u32 %v2103_v7, %v2101_v30 }
  0xa2   : > { %3273 = vmatmul.mubr.msk.bf16.gmra.mxu1 %vm362_vm2, %v1522_v35  ;;  %v3483_v35 = vld [vmem:[%s3642_s7 + $0x48] sm:$0xff]  }
  0xa3   : > { %3299 = vmatmul.mubr.msk.bf16.gmra.mxu0 %vm362_vm2, %v3467_v1  ;;  %3276 = vmatprep.mubr.msk.bf16.mxu1 %vm362_vm2, %v1524_v48  ;;  %v2356_v1 = vrot.slane %v3481_v38, 1  ;;  %v2097_v48 = vor.u32 %v2095_v45, %v2093_v39  ;;  %v2360_v56 = vrot.slane %v3483_v35, 1  ;;  %v2145_v39 = vor.u32 %v2143_v26, %v2141_v20 }
  0xa4   : > { %3302 = vmatprep.mubr.msk.bf16.mxu0 %vm362_vm2, %v3468_v15  ;;  %v2358_v15 = vrot.slane %v3482_v42, 1  ;;  %v2369_v45 = vsel %vm678_vm3, %v2366_v11, %v2368_v34 }
  0xa5   : > { %v2102_v32 = vsel %vm261_vm1, %v2097_v48, %v2101_v30  ;;  %v2159_v30 = vshrl.u32 %v3488_v21, 16 }
  0xa6   : > { %v2361_v0 = vsel %vm678_vm3, %v2358_v15, %v2360_v56 }
  0xaa   : > { %3277 = vmatmul.mubr.msk.bf16.gmra.mxu1 %vm362_vm2, %v1526_v52  ;;  %v2359_v52 = vsel %vm678_vm3, %v2356_v1, %v2358_v15 }
  0xab   : > { %3303 = vmatmul.mubr.msk.bf16.gmra.mxu0 %vm362_vm2, %v3469_v18  ;;  %3280 = vmatprep.mubr.msk.bf16.mxu1 %vm362_vm2, %v1528_v53  ;;  %v2109_v18 = vrot.slane %v2107_v63, 1  ;;  %v2115_v53 = vshll.u32 %v3483_v35, 16  ;;  %v2371_v63 = vsel %vm678_vm3, %v2368_v34, %v2370_v41 }
  0xac   : > { %3306 = vmatprep.mubr.msk.bf16.mxu0 %vm362_vm2, %v3470_v28  ;;  %v2357_v28 = vsel %vm678_vm3, %v2354_v36, %v2356_v1  ;;  %v2150_v1 = vsel %vm261_vm1, %v2145_v39, %v2149_v40 }
  0xad   : > { %v2110_v27 = vsel %vm261_vm1, %v2105_v12, %v2109_v18 }
  0xb2   : > { %3281 = vmatmul.mubr.msk.bf16.gmra.mxu1 %vm362_vm2, %v1530_v57  ;;  %v2117_v57 = vrot.slane %v2115_v53, 1 }
  0xb3   : > { %3307 = vmatmul.mubr.msk.bf16.gmra.mxu0 %vm362_vm2, %v3471_v54  ;;  %3284 = vmatprep.mubr.msk.bf16.mxu1 %vm362_vm2, %v1532_v58  ;;  %v2111_v54 = vshrl.u32 %v3482_v42, 16  ;;  %v2362_v58 = vrot.slane %v3484_v49, 1  ;;  %v3489_v42 = vld [vmem:[%s3642_s7 + $0x78] ss:$0 sps:$4 sm:$0x11]   ;;  %s2971_s7 = sshll.u32 %s3596_s16, 10 }
  0xb4   : > { %3310 = vmatprep.mubr.msk.bf16.mxu0 %vm362_vm2, %v3472_v50  ;;  %v2119_v50 = vshrl.u32 %v3483_v35, 16  ;;  %v2163_v15 = vshll.u32 %v3489_v42, 16  ;;  %s4319_s11 = scalar_lea.hbm %s4369_s3, %s2971_s7  ;;  %s3552_s16 = smov [#allocation2]  }
  0xb5   : > { %v2113_v47 = vor.u32 %v2111_v54, %v2109_v18  ;;  %v2363_v2 = vsel %vm678_vm3, %v2360_v56, %v2362_v58  ;;  %v2365_v22 = vsel %vm678_vm3, %v2362_v58, %v2364_v59  ;;  %v2372_v18 = vrot.slane %v3489_v42, 1  ;;  %s3494_s20 = sshll.u32 %s3552_s16, 4  ;;  %s3495_s20 = int_to_ptr.vmem [resolvable:$false] %s3494_s20 }
  0xb6   : > { %v2121_v51 = vor.u32 %v2119_v50, %v2117_v57  ;;  %v2165_v53 = vrot.slane %v2163_v15, 1  ;;  %s3496_s24 = scalar_lea.vmem %s3495_s20, 2048  ;;  %p3497_p0 = scmp.lt.s32.totalorder %s4321_s8, %s3495_s20 }
  0xb7   : > { %v2118_v4 = vsel %vm261_vm1, %v2113_v47, %v2117_v57  ;;  %p3498_p1 = scmp.lt.s32.totalorder %s3496_s24, %s3490_s19 }
  0xb9   : > { %p3499_p2 = por %p3498_p1, %p3497_p0 }
  0xba   : > { %3285 = vmatmul.mubr.msk.bf16.gmra.mxu1 %vm362_vm2, %v1534_v8  ;;  %v2127_v8 = vshrl.u32 %v3484_v49, 16 }
  0xbb   : > { %3311 = vmatmul.mubr.msk.bf16.gmra.mxu0 %vm362_vm2, %v3473_v61  ;;  %3288 = vmatprep.mubr.msk.bf16.mxu1 %vm362_vm2, %v1536_v9  ;;  %v2125_v61 = vrot.slane %v2123_v13, 1  ;;  %p3500_p3 = pnand %p3499_p2, %p3493_p13 }
  0xbc   : > { %3314 = vmatprep.mubr.msk.bf16.mxu0 %vm362_vm2, %v3474_v3  ;;  %v2131_v3 = vshll.u32 %v3485_v60, 16 }
  0xbd   : > { %v2126_v9 = vsel %vm261_vm1, %v2121_v51, %v2125_v61  ;;  %v2129_v17 = vor.u32 %v2127_v8, %v2125_v61 }
  0xbe   : > { %v2133_v24 = vrot.slane %v2131_v3, 1 }
  0xc2   : > { %3289 = vmatmul.mubr.msk.bf16.gmra.mxu1 %vm362_vm2, %v1538_v62  ;;  %v2134_v62 = vsel %vm261_vm1, %v2129_v17, %v2133_v24 }
  0xc3   : > { %3315 = vmatmul.mubr.msk.bf16.gmra.mxu0 %vm362_vm2, %v3475_v19  ;;  %3320 = vmatprep.mubr.msk.bf16.mxu1 %vm362_vm2, %v2078_v29  ;;  %v2137_v19 = vor.u32 %v2135_v37, %v2133_v24 }
  0xc4   : > { %3346 = vmatprep.mubr.msk.bf16.mxu0 %vm362_vm2, %v2351_v23  ;;  %v2367_v23 = vsel %vm678_vm3, %v2364_v59, %v2366_v11 }
  0xc5   : > { %v2142_v31 = vsel %vm261_vm1, %v2137_v19, %v2141_v20 }
  0xca   : > { %3321 = vmatmul.mubr.msk.bf16.vlgmr.msra.gmra.mxu1 %vm362_vm2, %v2086_v43  ;;  %v2157_v43 = vrot.slane %v2155_v16, 1 }
  0xcb   : > { %3347 = vmatmul.mubr.msk.bf16.vlgmr.msra.gmra.mxu0 %vm362_vm2, %v2353_v6  ;;  %3324 = vmatprep.mubr.msk.bf16.mxu1 %vm362_vm2, %v2094_v46 }
  0xcc   : > { %3350 = vmatprep.mubr.msk.bf16.mxu0 %vm362_vm2, %v2355_v55  ;;  %v2158_v12 = vsel %vm261_vm1, %v2153_v33, %v2157_v43 }
  0xd2   : > { %3325 = vmatmul.mubr.msk.bf16.gmra.mxu1 %vm362_vm2, %v2102_v32 }
  0xd3   : > { %3351 = vmatmul.mubr.msk.bf16.gmra.mxu0 %vm362_vm2, %v2357_v28  ;;  %3328 = vmatprep.mubr.msk.bf16.mxu1 %vm362_vm2, %v2110_v27  ;;  %v2373_v27 = vsel %vm678_vm3, %v2370_v41, %v2372_v18 }
  0xd4   : > { %3354 = vmatprep.mubr.msk.bf16.mxu0 %vm362_vm2, %v2359_v52  ;;  %v2161_v52 = vor.u32 %v2159_v30, %v2157_v43 }
  0xd6   : > { %v2166_v56 = vsel %vm261_vm1, %v2161_v52, %v2165_v53 }
  0xda   : > { %3329 = vmatmul.mubr.msk.bf16.gmra.mxu1 %vm362_vm2, %v2118_v4 }
  0xdb   : > { %3355 = vmatmul.mubr.msk.bf16.gmra.mxu0 %vm362_vm2, %v2361_v0  ;;  %3332 = vmatprep.mubr.msk.bf16.mxu1 %vm362_vm2, %v2126_v9 }
  0xdc   : > { %3358 = vmatprep.mubr.msk.bf16.mxu0 %vm362_vm2, %v2363_v2 }
  0xe2   : > { %v3152_v36 = vpop.f32.mrf.mxu1  ;;  %3333 = vmatmul.mubr.msk.bf16.gmra.mxu1 %vm362_vm2, %v2134_v62 }
  0xe3   : > { %v3140_v29 = vpop.f32.mrf.mxu0  ;;  %3359 = vmatmul.mubr.msk.bf16.gmra.mxu0 %vm362_vm2, %v2365_v22  ;;  %3336 = vmatprep.mubr.msk.bf16.mxu1 %vm362_vm2, %v2142_v31 }
  0xe4   : > { %3362 = vmatprep.mubr.msk.bf16.mxu0 %vm362_vm2, %v2367_v23  ;;  %v4083_v6 = vpop.f32.mrf.mxu1 }
  0xe5   : > { %v437_v38 = vpop.f32.mrf.mxu0 }
  0xe6   : > { %v4086_v46 = vpop.f32.mrf.mxu1 }
  0xe7   : > { %v3141_v55 = vpop.f32.mrf.mxu0 }
  0xe8   : > { %v4090_v35 = vpop.f32.mrf.mxu1 }
  0xe9   : > { %v440_v7 = vpop.f32.mrf.mxu0 }
  0xea   : > { %v4095_v49 = vpop.f32.mrf.mxu1  ;;  %3337 = vmatmul.mubr.msk.bf16.gmra.mxu1 %vm362_vm2, %v2150_v1 }
  0xeb   : > { %v3144_v48 = vpop.f32.mrf.mxu0  ;;  %3363 = vmatmul.mubr.msk.bf16.gmra.mxu0 %vm362_vm2, %v2369_v45  ;;  %3340 = vmatprep.mubr.msk.bf16.mxu1 %vm362_vm2, %v2158_v12 }
  0xec   : > { %3366 = vmatprep.mubr.msk.bf16.mxu0 %vm362_vm2, %v2371_v63  ;;  %v4099_v32 = vpop.f32.mrf.mxu1 }
  0xed   : > { %v452_v28 = vpop.f32.mrf.mxu0 }
  0xee   : > { %v4102_v50 = vpop.f32.mrf.mxu1 }
  0xef   : > { %v3145_v54 = vpop.f32.mrf.mxu0 }
  0xf0   : > { %v499_v57 = vpop.f32.mrf.mxu1 }
  0xf1   : > { %v455_v13 = vpop.f32.mrf.mxu0 }
  0xf2   : > { %v4106_v60 = vpop.f32.mrf.mxu1  ;;  %3341 = vmatmul.mubr.msk.bf16.gmra.mxu1 %vm362_vm2, %v2166_v56 }
  0xf3   : > { %v3148_v58 = vpop.f32.mrf.mxu0  ;;  %3367 = vmatmul.mubr.msk.bf16.gmra.mxu0 %vm362_vm2, %v2373_v27 }
  0xf4   : > { %v511_v51 = vpop.f32.mrf.mxu1 }
  0xf5   : > { %v467_v47 = vpop.f32.mrf.mxu0 }
  0xf6   : > { %v3161_v14 = vpop.f32.mrf.mxu1 }
  0xf7   : > { %v3149_v61 = vpop.f32.mrf.mxu0 }
  0xf8   : > { %v4109_v2 = vpop.f32.mrf.mxu1 }
  0xf9   : > { %v469_v0 = vpop.f32.mrf.mxu0 }
  0xfa   : > { %v3166_v4 = vpop.f32.mrf.mxu1 }
  0xfb   : > { %v3192_v3 = vpop.f32.mrf.mxu0 }
  0xfc   : > { %v585_v9 = vpop.f32.mrf.mxu1 }
  0xfd   : > { %v777_v8 = vpop.f32.mrf.mxu0  ;;  %v586_v10 = vadd.f32 %v585_v9, %v437_v38 }
  0xfe   : > { %v3167_v59 = vpop.f32.mrf.mxu1 }
  0xff   : > { %v3193_v37 = vpop.f32.mrf.mxu0  ;;  %v4111_v11 = vadd.f32 %v777_v8, %v586_v10  ;;  %v596_v44 = vadd.f32 %v3167_v59, %v3141_v55 }
 0x100   : > { %v588_v17 = vpop.f32.mrf.mxu1 }
 0x101   : > { %v780_v24 = vpop.f32.mrf.mxu0  ;;  %v4113_v20 = vadd.f32 %v3193_v37, %v596_v44  ;;  %v589_v21 = vadd.f32 %v588_v17, %v440_v7 }
 0x102   : > { %v3170_v22 = vpop.f32.mrf.mxu1 }
 0x103   : > { %v3196_v19 = vpop.f32.mrf.mxu0  ;;  %v4115_v25 = vadd.f32 %v780_v24, %v589_v21  ;;  %v608_v62 = vadd.f32 %v3170_v22, %v3144_v48 }
 0x104   : > { %v600_v26 = vpop.f32.mrf.mxu1 }
 0x105   : > { %v792_v23 = vpop.f32.mrf.mxu0  ;;  %v4117_v31 = vadd.f32 %v3196_v19, %v608_v62  ;;  %v601_v5 = vadd.f32 %v600_v26, %v452_v28 }
 0x106   : > { %v3171_v16 = vpop.f32.mrf.mxu1 }
 0x107   : > { %v3197_v29 = vpop.f32.mrf.mxu0  ;;  %v4119_v36 = vadd.f32 %v792_v23, %v601_v5  ;;  %v611_v38 = vadd.f32 %v3171_v16, %v3145_v54 }
 0x108   : > { %v603_v40 = vpop.f32.mrf.mxu1 }
 0x109   : > { %v795_v34 = vpop.f32.mrf.mxu0  ;;  %v4121_v39 = vadd.f32 %v3197_v29, %v611_v38 }
 0x10a   : > { %v3174_v42 = vpop.f32.mrf.mxu1 }
 0x10b   : > { %v3200_v41 = vpop.f32.mrf.mxu0  ;;  %v623_v33 = vadd.f32 %v3174_v42, %v3148_v58 }
 0x10c   : > { %v615_v43 = vpop.f32.mrf.mxu1 }
 0x10d   : > { %v807_v55 = vpop.f32.mrf.mxu0  ;;  %v4123_v7 = vadd.f32 %v3200_v41, %v623_v33 }
 0x10e   : > { %v3175_v63 = vpop.f32.mrf.mxu1 }
 0x10f   : > { %v3201_v45 = vpop.f32.mrf.mxu0 }
 0x110   : > { %v617_v30 = vpop.f32.mrf.mxu1 }
 0x111   : > { %v809_v1 = vpop.f32.mrf.mxu0  ;;  %v618_v48 = vadd.f32 %v617_v30, %v469_v0 }
 0x112   : > { %v3178_v12 = vpop.f32.mrf.mxu1 }
 0x113   : > { %v3204_v15 = vpop.f32.mrf.mxu0  ;;  %v4125_v28 = vadd.f32 %v809_v1, %v618_v48 }
 0x114   : > { %v629_v52 = vpop.f32.mrf.mxu1 }
 0x115   : > { %v821_v18 = vpop.f32.mrf.mxu0  ;;  %v630_v54 = vadd.f32 %v629_v52, %v4083_v6 }
 0x116   : > { %v3179_v27 = vpop.f32.mrf.mxu1 }
 0x117   : > { %v3205_v53 = vpop.f32.mrf.mxu0  ;;  %v4128_v56 = vadd.f32 %v821_v18, %v630_v54  ;;  %v640_v57 = vadd.f32 %v3179_v27, %v4086_v46 }
 0x118   : > { %v632_v58 = vpop.f32.mrf.mxu1 }
 0x119   : > { %v824_v13 = vpop.f32.mrf.mxu0  ;;  %v4131_v51 = vadd.f32 %v3205_v53, %v640_v57  ;;  %v633_v61 = vadd.f32 %v632_v58, %v4090_v35 }
 0x11a   : > { %v3182_v14 = vpop.f32.mrf.mxu1 }
 0x11b   : > { %v3208_v47 = vpop.f32.mrf.mxu0  ;;  %v4134_v3 = vadd.f32 %v824_v13, %v633_v61  ;;  %v652_v4 = vadd.f32 %v3182_v14, %v4095_v49 }
 0x11c   : > { %v644_v8 = vpop.f32.mrf.mxu1 }
 0x11d   : > { %v836_v0 = vpop.f32.mrf.mxu0  ;;  %v4137_v9 = vadd.f32 %v3208_v47, %v652_v4  ;;  %v645_v37 = vadd.f32 %v644_v8, %v4099_v32 }
 0x11e   : > { %v3183_v10 = vpop.f32.mrf.mxu1 }
 0x11f   : > { %v3209_v6 = vpop.f32.mrf.mxu0  ;;  %v4140_v59 = vadd.f32 %v836_v0, %v645_v37  ;;  %v655_v24 = vadd.f32 %v3183_v10, %v4102_v50 }
 0x120   : > { %v647_v44 = vpop.f32.mrf.mxu1 }
 0x121   : > { %v839_v46 = vpop.f32.mrf.mxu0  ;;  %v4143_v17 = vadd.f32 %v3209_v6, %v655_v24 }
 0x122   : > { %v3186_v19 = vpop.f32.mrf.mxu1 }
 0x123   : > { %v3212_v35 = vpop.f32.mrf.mxu0  ;;  %v667_v49 = vadd.f32 %v3186_v19, %v4106_v60 }
 0x124   : > { %v659_v22 = vpop.f32.mrf.mxu1 }
 0x125   : > { %v851_v21 = vpop.f32.mrf.mxu0  ;;  %v4146_v62 = vadd.f32 %v3212_v35, %v667_v49 }
 0x126   : > { %v3187_v26 = vpop.f32.mrf.mxu1 }
 0x127   : > { %v3213_v23 = vpop.f32.mrf.mxu0 }
 0x128   : > { %v661_v29 = vpop.f32.mrf.mxu1 }
 0x129   : > { %v853_v32 = vpop.f32.mrf.mxu0  ;;  %v662_v16 = vadd.f32 %v661_v29, %v4109_v2 }
 0x12a   : > { %v3218_v34 = vpop.f32.mrf.mxu1 }
 0x12b   : > { %v3244_v5 = vpop.f32.mrf.mxu0  ;;  %v4149_v38 = vadd.f32 %v853_v32, %v662_v16 }
 0x12c   : > { %v1039_v40 = vpop.f32.mrf.mxu1 }
 0x12d   : > { %v1405_v50 = vpop.f32.mrf.mxu0  ;;  %v1126_v42 = vadd.f32 %v1039_v40, %v4111_v11 }
 0x12e   : > { %v3219_v55 = vpop.f32.mrf.mxu1 }
 0x12f   : > { %v3245_v41 = vpop.f32.mrf.mxu0  ;;  %v4152_v33 = vadd.f32 %v1405_v50, %v1126_v42  ;;  %v1128_v43 = vadd.f32 %v3219_v55, %v4113_v20 }
 0x130   : > { %v1042_v45 = vpop.f32.mrf.mxu1 }
 0x131   : > { %v1408_v60 = vpop.f32.mrf.mxu0  ;;  %v4155_v1 = vadd.f32 %v3245_v41, %v1128_v43  ;;  %v1127_v2 = vadd.f32 %v1042_v45, %v4115_v25 }
 0x132   : > { %v3222_v30 = vpop.f32.mrf.mxu1 }
 0x133   : > { %v3248_v63 = vpop.f32.mrf.mxu0  ;;  %v4158_v48 = vadd.f32 %v1408_v60, %v1127_v2  ;;  %v1130_v12 = vadd.f32 %v3222_v30, %v4117_v31 }
 0x134   : > { %v1054_v18 = vpop.f32.mrf.mxu1 }
 0x135   : > { %v1420_v15 = vpop.f32.mrf.mxu0  ;;  %v4161_v52 = vadd.f32 %v3248_v63, %v1130_v12  ;;  %v1129_v53 = vadd.f32 %v1054_v18, %v4119_v36 }
 0x136   : > { %v3223_v54 = vpop.f32.mrf.mxu1 }
 0x137   : > { %v3249_v11 = vpop.f32.mrf.mxu0  ;;  %v4164_v27 = vadd.f32 %v1420_v15, %v1129_v53  ;;  %v1131_v13 = vadd.f32 %v3223_v54, %v4121_v39 }
 0x138   : > { %v1057_v57 = vpop.f32.mrf.mxu1 }
 0x139   : > { %v1423_v20 = vpop.f32.mrf.mxu0  ;;  %v4167_v58 = vadd.f32 %v3249_v11, %v1131_v13 }
 0x13a   : > { %v3226_v47 = vpop.f32.mrf.mxu1 }
 0x13b   : > { %v3252_v25 = vpop.f32.mrf.mxu0  ;;  %v1133_v31 = vadd.f32 %v3226_v47, %v4123_v7 }
 0x13c   : > { %v1069_v14 = vpop.f32.mrf.mxu1 }
 0x13d   : > { %v1435_v61 = vpop.f32.mrf.mxu0  ;;  %v4170_v4 = vadd.f32 %v3252_v25, %v1133_v31 }
 0x13e   : > { %v3227_v8 = vpop.f32.mrf.mxu1 }
 0x13f   : > { %v3253_v0 = vpop.f32.mrf.mxu0 }
 0x140   : > { %v1071_v6 = vpop.f32.mrf.mxu1 }
 0x141   : > { %v1437_v36 = vpop.f32.mrf.mxu0  ;;  %v1132_v10 = vadd.f32 %v1071_v6, %v4125_v28 }
 0x142   : > { %v3230_v46 = vpop.f32.mrf.mxu1 }
 0x143   : > { %v3256_v37 = vpop.f32.mrf.mxu0  ;;  %v4173_v24 = vadd.f32 %v1437_v36, %v1132_v10 }
 0x144   : > { %v1083_v44 = vpop.f32.mrf.mxu1 }
 0x145   : > { %v1449_v39 = vpop.f32.mrf.mxu0  ;;  %v1134_v19 = vadd.f32 %v1083_v44, %v4128_v56 }
 0x146   : > { %v3231_v21 = vpop.f32.mrf.mxu1 }
 0x147   : > { %v3257_v35 = vpop.f32.mrf.mxu0  ;;  %v4176_v49 = vadd.f32 %v1449_v39, %v1134_v19  ;;  %v1136_v22 = vadd.f32 %v3231_v21, %v4131_v51 }
 0x148   : > { %v1086_v23 = vpop.f32.mrf.mxu1 }
 0x149   : > { %v1452_v7 = vpop.f32.mrf.mxu0  ;;  %v4179_v32 = vadd.f32 %v3257_v35, %v1136_v22  ;;  %v1135_v28 = vadd.f32 %v1086_v23, %v4134_v3 }
 0x14a   : > { %v3234_v29 = vpop.f32.mrf.mxu1 }
 0x14b   : > { %v3260_v26 = vpop.f32.mrf.mxu0  ;;  %v4182_v16 = vadd.f32 %v1452_v7, %v1135_v28  ;;  %v1138_v34 = vadd.f32 %v3234_v29, %v4137_v9 }
 0x14c   : > { %v1098_v50 = vpop.f32.mrf.mxu1 }
 0x14d   : > { %v1464_v5 = vpop.f32.mrf.mxu0  ;;  %v4185_v40 = vadd.f32 %v3260_v26, %v1138_v34  ;;  %v1137_v41 = vadd.f32 %v1098_v50, %v4140_v59 }
 0x14e   : > { %v3235_v42 = vpop.f32.mrf.mxu1 }
 0x14f   : > { %v3261_v56 = vpop.f32.mrf.mxu0  ;;  %v4188_v55 = vadd.f32 %v1464_v5, %v1137_v41  ;;  %v1139_v60 = vadd.f32 %v3235_v42, %v4143_v17 }
 0x150   : > { %v1101_v43 = vpop.f32.mrf.mxu1 }
 0x151   : > { %v1467_v51 = vpop.f32.mrf.mxu0  ;;  %v4191_v45 = vadd.f32 %v3261_v56, %v1139_v60 }
 0x152   : > { %v3238_v63 = vpop.f32.mrf.mxu1 }
 0x153   : > { %v3264_v3 = vpop.f32.mrf.mxu0  ;;  %v1141_v9 = vadd.f32 %v3238_v63, %v4146_v62 }
 0x154   : > { %v1113_v30 = vpop.f32.mrf.mxu1 }
 0x155   : > { %v1479_v2 = vpop.f32.mrf.mxu0  ;;  %v4194_v12 = vadd.f32 %v3264_v3, %v1141_v9 }
 0x156   : > { %v3239_v18 = vpop.f32.mrf.mxu1 }
 0x157   : > { %v3265_v15 = vpop.f32.mrf.mxu0 }
 0x158   : > { %v1115_v11 = vpop.f32.mrf.mxu1 }
 0x159   : > { %v1481_v59 = vpop.f32.mrf.mxu0  ;;  %v1140_v54 = vadd.f32 %v1115_v11, %v4149_v38 }
 0x15a   : > { %v3270_v20 = vpop.f32.mrf.mxu1 }
 0x15b   : > { %v3296_v53 = vpop.f32.mrf.mxu0  ;;  %v4197_v13 = vadd.f32 %v1481_v59, %v1140_v54 }
 0x15c   : > { %v1612_v57 = vpop.f32.mrf.mxu1 }
 0x15d   : > { %v1874_v17 = vpop.f32.mrf.mxu0  ;;  %v1699_v53 = vadd.f32 %v1612_v57, %v4152_v33 }
 0x15e   : > { %v3271_v47 = vpop.f32.mrf.mxu1 }
 0x15f   : > { %v3297_v25 = vpop.f32.mrf.mxu0 }
 0x160   : > { %v1615_v31 = vpop.f32.mrf.mxu1 }
 0x161   : > { %v1877_v61 = vpop.f32.mrf.mxu0 }
 0x162   : > { %v3274_v14 = vpop.f32.mrf.mxu1 }
 0x163   : > { %v3300_v62 = vpop.f32.mrf.mxu0 }
 0x164   : > { %v1627_v8 = vpop.f32.mrf.mxu1 }
 0x165   : > { %v4199_v0 = vpop.f32.mrf.mxu0  ;;  %v1702_v57 = vadd.f32 %v1627_v8, %v4164_v27 }
 0x166   : > { %v3275_v6 = vpop.f32.mrf.mxu1 }
 0x167   : > { %v4201_v36 = vpop.f32.mrf.mxu0  ;;  %v1964_v27 = vadd.f32 %v4199_v0, %v1702_v57 }
 0x168   : > { %v1630_v10 = vpop.f32.mrf.mxu1 }
 0x169   : > { %v1892_v37 = vpop.f32.mrf.mxu0 }
 0x16a   : > { %v4205_v46 = vpop.f32.mrf.mxu1  ;;  %v1701_v37 = vadd.f32 %v3271_v47, %v4155_v1  ;;  %v4251_v1 = vld [vmem:[%s4368_s2] ss:$0 sm:$0xff] }
 0x16b   : > { %v4203_v38 = vpop.f32.mrf.mxu0 }
 0x16c   : > { %v1642_v44 = vpop.f32.mrf.mxu1 }
 0x16d   : > { %v1904_v39 = vpop.f32.mrf.mxu0  ;;  %v1961_v44 = vadd.f32 %v1874_v17, %v1699_v53 }
 0x16e   : > { %v3279_v19 = vpop.f32.mrf.mxu1 }
 0x16f   : > { %v3305_v35 = vpop.f32.mrf.mxu0 }
 0x170   : > { %v4209_v7 = vpop.f32.mrf.mxu1  ;;  %v1700_v35 = vadd.f32 %v1615_v31, %v4158_v48  ;;  %v1704_v31 = vadd.f32 %v3275_v6, %v4167_v58 }
 0x171   : > { %v4207_v21 = vpop.f32.mrf.mxu0 }
 0x172   : > { %v3282_v23 = vpop.f32.mrf.mxu1  ;;  %v1962_v33 = vadd.f32 %v1877_v61, %v1700_v35 }
 0x173   : > { %v3308_v22 = vpop.f32.mrf.mxu0  ;;  %v1963_v23 = vadd.f32 %v3297_v25, %v1701_v37  ;;  %v1706_v37 = vadd.f32 %v4205_v46, %v4170_v4 }
 0x174   : > { %v4213_v28 = vpop.f32.mrf.mxu1 }
 0x175   : > { %v4211_v26 = vpop.f32.mrf.mxu0  ;;  %v1968_v4 = vadd.f32 %v4203_v38, %v1706_v37 }
 0x176   : > { %v4217_v5 = vpop.f32.mrf.mxu1 }
 0x177   : > { %v4215_v29 = vpop.f32.mrf.mxu0 }
 0x178   : > { %v4221_v50 = vpop.f32.mrf.mxu1 }
 0x179   : > { %v4219_v34 = vpop.f32.mrf.mxu0 }
 0x17a   : > { %v4225_v41 = vpop.f32.mrf.mxu1 }
 0x17b   : > { %v4223_v56 = vpop.f32.mrf.mxu0 }
 0x17c   : > { %v4229_v51 = vpop.f32.mrf.mxu1 }
 0x17d   : > { %v4227_v42 = vpop.f32.mrf.mxu0 }
 0x17e   : > { %v4233_v43 = vpop.f32.mrf.mxu1 }
 0x17f   : > { %v4231_v60 = vpop.f32.mrf.mxu0 }
 0x180   : > { %v1674_v63 = vpop.f32.mrf.mxu1 }
 0x181   : > { %v1936_v3 = vpop.f32.mrf.mxu0 }
 0x182   : > { %v4237_v9 = vpop.f32.mrf.mxu1  ;;  %v1703_v3 = vadd.f32 %v3274_v14, %v4161_v52 }
 0x183   : > { %v4235_v2 = vpop.f32.mrf.mxu0 }
 0x184   : > { %v1686_v15 = vpop.f32.mrf.mxu1  ;;  %v1965_v25 = vadd.f32 %v3300_v62, %v1703_v3  ;;  %v1966_v62 = vadd.f32 %v4201_v36, %v1704_v31 }
 0x185   : > { %v1948_v30 = vpop.f32.mrf.mxu0 }
 0x186   : > { %v3291_v59 = vpop.f32.mrf.mxu1 }
 0x187   : > { %v3317_v18 = vpop.f32.mrf.mxu0 }
 0x188   : > { %v4242_v54 = vpop.f32.mrf.mxu1 }
 0x189   : > { %v4239_v11 = vpop.f32.mrf.mxu0 }
 0x18a   : > { %v3322_v10 = vpop.f32.mrf.mxu1 }
 0x18b   : > { %v3348_v20 = vpop.f32.mrf.mxu0 }
 0x18c   : > { %v2240_v19 = vpop.f32.mrf.mxu1 }
 0x18d   : > { %v2447_v39 = vpop.f32.mrf.mxu0  ;;  %v2327_v63 = vadd.f32 %v2240_v19, %v1961_v44 }
 0x18e   : > { %v3323_v30 = vpop.f32.mrf.mxu1 }
 0x18f   : > { %v3349_v22 = vpop.f32.mrf.mxu0  ;;  %v2534_v18 = vadd.f32 %v2447_v39, %v2327_v63  ;;  %v2329_v17 = vadd.f32 %v3323_v30, %v1963_v23 }
 0x190   : > { %v2243_v48 = vpop.f32.mrf.mxu1 }
 0x191   : > { %v2450_v15 = vpop.f32.mrf.mxu0  ;;  %v2328_v52 = vadd.f32 %v2243_v48, %v1962_v33  ;;  %v2557_v14 = vadd.f32 %v4251_v1, %v2534_v18  ;;  %v2536_v8 = vadd.f32 %v3349_v22, %v2329_v17  ;;  %v1705_v18 = vadd.f32 %v4209_v7, %v4173_v24 }
 0x192   : > { %v3326_v61 = vpop.f32.mrf.mxu1 }
 0x193   : > { %v3352_v47 = vpop.f32.mrf.mxu0  ;;  %v2535_v53 = vadd.f32 %v2450_v15, %v2328_v52  ;;  %v2331_v20 = vadd.f32 %v3326_v61, %v1965_v25  ;;  %v2573_v35 = vmax.f32 %v2557_v14, 0.0  ;;  %v2559_v0 = vadd.f32 %v4251_v1, %v2536_v8 }
 0x194   : > { %v2255_v10 = vpop.f32.mrf.mxu1  ;;  %v1967_v7 = vadd.f32 %v4207_v21, %v1705_v18 }
 0x195   : > { %v2462_v59 = vpop.f32.mrf.mxu0  ;;  %v2558_v58 = vadd.f32 %v4251_v1, %v2535_v53  ;;  %v2538_v6 = vadd.f32 %v3352_v47, %v2331_v20  ;;  %v2330_v44 = vadd.f32 %v2255_v10, %v1964_v27  ;;  %v2575_v47 = vmax.f32 %v2559_v0, 0.0 }
 0x196   : > { %v3327_v19 = vpop.f32.mrf.mxu1  ;;  %v1707_v53 = vadd.f32 %v4213_v28, %v4176_v49 }
 0x197   : > { %v3353_v39 = vpop.f32.mrf.mxu0  ;;  %v2574_v22 = vmax.f32 %v2558_v58, 0.0  ;;  %v2537_v3 = vadd.f32 %v2462_v59, %v2330_v44  ;;  %v2332_v63 = vadd.f32 %v3327_v19, %v1966_v62  ;;  %v2561_v36 = vadd.f32 %v4251_v1, %v2538_v6 }
 0x198   : > { %v2258_v46 = vpop.f32.mrf.mxu1  ;;  %v1709_v62 = vadd.f32 %v4217_v5, %v4179_v32  ;;  %v1708_v6 = vadd.f32 %v4221_v50, %v4182_v16  ;;  %v1969_v21 = vadd.f32 %v4211_v26, %v1707_v53  ;;  %v1710_v16 = vadd.f32 %v4229_v51, %v4188_v55 }
 0x199   : > { %v2465_v23 = vpop.f32.mrf.mxu0  ;;  %v2975_v15 = vpack.c.bf16 %v2574_v22, %v2573_v35  ;;  %v2560_v33 = vadd.f32 %v4251_v1, %v2537_v3  ;;  %v2539_v57 = vadd.f32 %v3353_v39, %v2332_v63  ;;  %v2577_v61 = vmax.f32 %v2561_v36, 0.0 }
 0x19a   : > { %v3330_v17 = vpop.f32.mrf.mxu1  ;;  %v1971_v0 = vadd.f32 %v4215_v29, %v1709_v62  ;;  %v1711_v22 = vadd.f32 %v4225_v41, %v4185_v40  ;;  %v1970_v3 = vadd.f32 %v4219_v34, %v1708_v6  ;;  %v1712_v40 = vadd.f32 %v4233_v43, %v4191_v45 }
 0x19b   : > { %v3356_v30 = vpop.f32.mrf.mxu0  ;;  %2976 = vst [vmem:[%s4269_s6] sm:$0xff] %v2975_v15   ;;  %v2576_v38 = vmax.f32 %v2560_v33, 0.0  ;;  %v2562_v25 = vadd.f32 %v4251_v1, %v2539_v57  ;;  %v2334_v31 = vadd.f32 %v3330_v17, %v1968_v4  ;;  %v1972_v51 = vadd.f32 %v4227_v42, %v1710_v16 }
 0x19c   : > { %v2270_v52 = vpop.f32.mrf.mxu1  ;;  %v1973_v36 = vadd.f32 %v4223_v56, %v1711_v22 }
 0x19d   : > { %v2477_v48 = vpop.f32.mrf.mxu0  ;;  %v2980_v59 = vpack.c.bf16 %v2576_v38, %v2575_v47  ;;  %v2578_v27 = vmax.f32 %v2562_v25, 0.0  ;;  %v2541_v37 = vadd.f32 %v3356_v30, %v2334_v31  ;;  %v1714_v47 = vadd.f32 %v4237_v9, %v4194_v12 }
 0x19e   : > { %v3331_v8 = vpop.f32.mrf.mxu1  ;;  %v1974_v25 = vadd.f32 %v4231_v60, %v1712_v40 }
 0x19f   : > { %v3357_v14 = vpop.f32.mrf.mxu0  ;;  %3012 = vst [vmem:[%s4269_s6 + $0x8] sm:$0xff] %v2980_v59   ;;  %v2985_v20 = vpack.c.bf16 %v2578_v27, %v2577_v61  ;;  %v2564_v19 = vadd.f32 %v4251_v1, %v2541_v37  ;;  %v1713_v37 = vadd.f32 %v4242_v54, %v4197_v13 }
 0x1a0   : > { %v2272_v10 = vpop.f32.mrf.mxu1 }
 0x1a1   : > { %v2479_v24 = vpop.f32.mrf.mxu0  ;;  %3013 = vst [vmem:[%s4269_s6 + $0x10] sm:$0xff] %v2985_v20   ;;  %v2333_v58 = vadd.f32 %v2272_v10, %v1967_v7  ;;  %v2580_v63 = vmax.f32 %v2564_v19, 0.0 }
 0x1a2   : > { %v3334_v44 = vpop.f32.mrf.mxu1 }
 0x1a3   : > { %v3360_v39 = vpop.f32.mrf.mxu0  ;;  %v2540_v49 = vadd.f32 %v2479_v24, %v2333_v58  ;;  %v1976_v24 = vadd.f32 %v4235_v2, %v1714_v47 }
 0x1a4   : > { %v2284_v28 = vpop.f32.mrf.mxu1 }
 0x1a5   : > { %v2491_v35 = vpop.f32.mrf.mxu0  ;;  %v2563_v32 = vadd.f32 %v4251_v1, %v2540_v49  ;;  %v2335_v5 = vadd.f32 %v2284_v28, %v1969_v21 }
 0x1a6   : > { %v3335_v50 = vpop.f32.mrf.mxu1 }
 0x1a7   : > { %v3361_v23 = vpop.f32.mrf.mxu0  ;;  %v2579_v4 = vmax.f32 %v2563_v32, 0.0  ;;  %v2542_v46 = vadd.f32 %v2491_v35, %v2335_v5  ;;  %v2337_v30 = vadd.f32 %v3335_v50, %v1971_v0 }
 0x1a8   : > { %v2287_v15 = vpop.f32.mrf.mxu1 }
 0x1a9   : > { %v2494_v26 = vpop.f32.mrf.mxu0  ;;  %v2990_v41 = vpack.c.bf16 %v2580_v63, %v2579_v4  ;;  %v2336_v33 = vadd.f32 %v2287_v15, %v1970_v3  ;;  %v2565_v34 = vadd.f32 %v4251_v1, %v2542_v46  ;;  %v2544_v18 = vadd.f32 %v3361_v23, %v2337_v30 }
 0x1aa   : > { %v3338_v57 = vpop.f32.mrf.mxu1  ;;  %v1975_v23 = vadd.f32 %v4239_v11, %v1713_v37 }
 0x1ab   : > { %v3364_v29 = vpop.f32.mrf.mxu0  ;;  %3014 = vst [vmem:[%s4269_s6 + $0x18] sm:$0xff] %v2990_v41   ;;  %v2543_v17 = vadd.f32 %v2494_v26, %v2336_v33  ;;  %v2339_v48 = vadd.f32 %v3338_v57, %v1973_v36  ;;  %v2581_v52 = vmax.f32 %v2565_v34, 0.0  ;;  %v2567_v42 = vadd.f32 %v4251_v1, %v2544_v18 }
 0x1ac   : > { %v2299_v38 = vpop.f32.mrf.mxu1 }
 0x1ad   : > { %v2506_v55 = vpop.f32.mrf.mxu0  ;;  %v2566_v45 = vadd.f32 %v4251_v1, %v2543_v17  ;;  %v2546_v43 = vadd.f32 %v3364_v29, %v2339_v48  ;;  %v2338_v31 = vadd.f32 %v2299_v38, %v1972_v51  ;;  %v2583_v62 = vmax.f32 %v2567_v42, 0.0 }
 0x1ae   : > { %v3339_v14 = vpop.f32.mrf.mxu1 }
 0x1af   : > { %v3365_v56 = vpop.f32.mrf.mxu0  ;;  %v2582_v59 = vmax.f32 %v2566_v45, 0.0  ;;  %v2545_v27 = vadd.f32 %v2506_v55, %v2338_v31  ;;  %v2340_v8 = vadd.f32 %v3339_v14, %v1974_v25  ;;  %v2569_v60 = vadd.f32 %v4251_v1, %v2546_v43 }
 0x1b0   : > { %v2302_v12 = vpop.f32.mrf.mxu1 }
 0x1b1   : > { %v2509_v61 = vpop.f32.mrf.mxu0  ;;  %v2995_v7 = vpack.c.bf16 %v2582_v59, %v2581_v52  ;;  %v2568_v53 = vadd.f32 %v4251_v1, %v2545_v27  ;;  %v2547_v20 = vadd.f32 %v3365_v56, %v2340_v8  ;;  %v2585_v21 = vmax.f32 %v2569_v60, 0.0 }
 0x1b2   : > { %v3342_v10 = vpop.f32.mrf.mxu1 }
 0x1b3   : > { %v3368_v9 = vpop.f32.mrf.mxu0  ;;  %3015 = vst [vmem:[%s4269_s6 + $0x20] sm:$0xff] %v2995_v7   ;;  %v2584_v58 = vmax.f32 %v2568_v53, 0.0  ;;  %v2570_v2 = vadd.f32 %v4251_v1, %v2547_v20  ;;  %v2342_v6 = vadd.f32 %v3342_v10, %v1976_v24 }
 0x1b4   : > { %v2314_v44 = vpop.f32.mrf.mxu1 }
 0x1b5   : > { %v2521_v39 = vpop.f32.mrf.mxu0  ;;  %v3000_v19 = vpack.c.bf16 %v2584_v58, %v2583_v62  ;;  %v2586_v49 = vmax.f32 %v2570_v2, 0.0  ;;  %v2549_v54 = vadd.f32 %v3368_v9, %v2342_v6 }
 0x1b6   : > { %v3343_v28 = vpop.f32.mrf.mxu1 }
 0x1b7   : > { %v3369_v35 = vpop.f32.mrf.mxu0  ;;  %3016 = vst [vmem:[%s4269_s6 + $0x28] sm:$0xff] %v3000_v19   ;;  %v3005_v13 = vpack.c.bf16 %v2586_v49, %v2585_v21  ;;  %v2572_v5 = vadd.f32 %v4251_v1, %v2549_v54 }
 0x1b8   : > { %v2316_v0 = vpop.f32.mrf.mxu1 }
 0x1b9   : > { %v2523_v22 = vpop.f32.mrf.mxu0  ;;  %3017 = vst [vmem:[%s4269_s6 + $0x30] sm:$0xff] %v3005_v13   ;;  %v2341_v32 = vadd.f32 %v2316_v0, %v1975_v23  ;;  %v2588_v50 = vmax.f32 %v2572_v5, 0.0 }
 0x1bb   : > { %v2548_v3 = vadd.f32 %v2523_v22, %v2341_v32 }
 0x1bd   : > { %v2571_v16 = vadd.f32 %v4251_v1, %v2548_v3 }
 0x1bf   : > { %v2587_v26 = vmax.f32 %v2571_v16, 0.0 }
 0x1c1   : > { %v3010_v11 = vpack.c.bf16 %v2588_v50, %v2587_v26 }
 0x1c3   : > { %3018 = vst [vmem:[%s4269_s6 + $0x38] sm:$0xff] %v3010_v11  }
 0x1c4   : > { %3503 = shalt.err (!%p3500_p3)
}
 0x1c5   : > { %s3504_s25 = scalar_lea.hbm %s4319_s11, 1024  ;;  %s3508_s28 = scalar_lea.hbm %s4369_s3, 4096 }
 0x1c6   : > { %p3505_p4 = scmp.ne.s32.totalorder %s4319_s11, %s3504_s25  ;;  %p3509_p9 = scmp.lt.s32.totalorder %s4319_s11, %s4369_s3 }
 0x1c7   : > { %p3510_p10 = scmp.lt.s32.totalorder %s3508_s28, %s3504_s25 }
 0x1c8   : > { %p3506_p7 = pnand %p3505_p4, %p3613_p5 }
 0x1c9   : > { %p3511_p11 = por %p3510_p10, %p3509_p9 }
 0x1ca   : > { %p3507_p8 = pneg %p3506_p7 }
 0x1cc   : > { %p3512_p12 = pnand %p3511_p11, %p3507_p8 }
 0x1ce   : > { %3515 = shalt.err (!%p3512_p12)
}
 0x1cf   : > { %s3553_s4 = smov 64   ;;  %s3554_s5 = smov 4  }
 0x1d0   : > { %3383 = dma.vmem_to_hbm [thread:$0]  (%p3613_p5), %s4321_s8, 1024, %s4319_s11, %s4326_s17, %s3553_s4, %s3553_s4, %s3554_s5  }
 0x1d1 PF: > { %p3389_p13 = scmp.ge.s32.totalorder %s3550_s15, 2  ;;  %s2698_s6 = sand.u32 1, %s3538_s12  }
 0x1d2   : > { %s2699_s7 = scalar_lea.sflag [#allocation3], %s2698_s6 }
 0x1d3   : > { %p3386_p0 = pnand %p3389_p13, %p3617_p6 }
 0x1d5   : > { %p3387_p1 = pneg %p3386_p0 }
 0x1d7   : > { %3533 = dma.done.wait (%p3387_p1), %s2699_s7, 1024  }
 0x1d8   : > { %3535 = vsyncadd (%p3387_p1), %s2699_s7, 4294966272  ;;  %p13_p2 = scmp.ge.s32.totalorder %s3600_s18, 6   ;;  %s4372_s12 = smov %s3542_s13 }
 0x1d9   : > { %s4373_s13 = smov %s3546_s14  ;;  %s4374_s14 = smov %s3611_s21 }
 0x1da   : > { %s4375_s15 = smov %s3600_s18  ;;  %15 = sbr.rel (!%p13_p2) target bundleno = 3 (0x3), region = 75 }
 0x1df   :  { %2704 = vsyncpa [#allocation3], 1 }
 0x1e0   :  { %2706 = vsyncpa [#allocation3 + $0x1], 1 }

</bundles_post_ra>
